<compile_context>
chip_gen: v7x
topology: tpu7x:2x2x1
jax: 0.10.0
libtpu: 0.0.40
codegen_flags: <defaults>
</compile_context>

<pallas_src>
import math

import jax
import jax.numpy as jnp
from jax.experimental import pallas as pl
from jax.experimental.pallas import tpu as pltpu

_LANE = 128
_SMALL_PROBLEM_BYTES = 2 * 1024 * 1024   # below this, XLA's fused elementwise wins
_TARGET_BLOCK_BYTES = 4 * 1024 * 1024    # target noise-block size (amortize ~0.35us/step)
_MAX_TILE_F = 2048                       # lane cap per block


def _mog_kernel(mean_ref, std_ref, noise_ref, out_ref):
    # mean_ref / std_ref : (1, TILE_F)      -- parameter tiles (sublane broadcast)
    # noise_ref / out_ref: (TILE_B, TILE_F) -- lane-dense data tiles
    out_ref[...] = (mean_ref[...] + std_ref[...] * noise_ref[...]).astype(out_ref.dtype)


def _round_up(x, m):
    return ((x + m - 1) // m) * m


def _largest_aligned_divisor(dim, align, cap):
    """Largest multiple of `align` that divides `dim` and is <= cap.

    `dim` must itself be a multiple of `align`, so the result is always
    >= `align` and never falls back to an unbounded full extent.
    """
    assert dim % align == 0 and dim >= align
    t = min((cap // align) * align, dim)
    t = max(t, align)
    while t > align:
        if dim % t == 0:
            return t
        t -= align
    return align


def mog_layer(mean, std, noise, *, min_pallas_bytes=_SMALL_PROBLEM_BYTES):
    """Computes mean + std * noise (params broadcast over leading batch dims)."""
    noise_dim = mean.shape
    assert std.shape == noise_dim
    nd = len(noise_dim)
    assert noise.shape[-nd:] == noise_dim, (noise.shape, noise_dim)

    out_dtype = jnp.result_type(mean.dtype, std.dtype, noise.dtype)

    F = math.prod(noise_dim)
    batch_shape = noise.shape[:-nd]
    B = math.prod(batch_shape) if batch_shape else 1
    out_shape = batch_shape + noise_dim

    itemsize = jnp.dtype(noise.dtype).itemsize
    out_itemsize = jnp.dtype(out_dtype).itemsize

    # Tiny problems: pallas_call launch + pipeline prologue dominate; XLA's
    # fused elementwise is strictly faster.
    total_bytes = B * F * (itemsize + out_itemsize)
    if total_bytes < min_pallas_bytes:
        return (mean + std * noise).astype(out_dtype)

    sublane = {4: 8, 2: 16, 1: 32}.get(itemsize, 8)

    # Lane-dense 2D views (free reshapes of contiguous arrays).
    noise2d = noise.reshape(B, F)
    mean2d = mean.reshape(1, F)
    std2d = std.reshape(1, F)

    # ---- Column (lane) tiling: pad F to a multiple of 128 so every store is a
    # full-lane (unmasked) vst, then take the largest 128-aligned divisor.
    F_pad = _round_up(F, _LANE)
    tile_f = _largest_aligned_divisor(F_pad, _LANE, _MAX_TILE_F)

    # ---- Row (sublane) tiling: target ~4 MiB noise blocks.
    rows_target = max(sublane,
                      (_TARGET_BLOCK_BYTES // (tile_f * itemsize)) // sublane * sublane)
    B8 = _round_up(B, sublane)
    tile_b = _largest_aligned_divisor(B8, sublane, rows_target)
    if tile_b * tile_f * itemsize < (1 << 20) and B8 > rows_target:
        # Divisor-based tile too small to amortize per-step overhead on a big
        # batch: use a full-size tile and pad B (waste bounded by < one tile).
        tile_b = rows_target
        B_pad = _round_up(B, tile_b)
    else:
        B_pad = B8

    # Wrapper-side padding (only when needed) so tiles divide exactly and the
    # block shape is always a multiple of (sublane, 128) -> bounded VMEM,
    # unmasked stores, no shape-dependent fallback.
    if F_pad != F:
        mean2d = jnp.pad(mean2d, ((0, 0), (0, F_pad - F)))
        std2d = jnp.pad(std2d, ((0, 0), (0, F_pad - F)))
        noise2d = jnp.pad(noise2d, ((0, 0), (0, F_pad - F)))
    if B_pad != B:
        noise2d = jnp.pad(noise2d, ((0, B_pad - B), (0, 0)))

    # Rows leading: on v7x the multi-block axis is the one split across the
    # two TensorCores (F typically fits a single lane tile).
    grid = (B_pad // tile_b, F_pad // tile_f)

    # Explicit VMEM budget: double-buffered noise-in + out blocks, tiny param
    # buffers, plus margin.  Stays well inside v7x's 64 MiB physical VMEM and
    # v5e/v6e's 128 MiB.
    param_bytes = (jnp.dtype(mean.dtype).itemsize + jnp.dtype(std.dtype).itemsize)
    vmem_bytes = (2 * tile_b * tile_f * (itemsize + out_itemsize)
                  + 4 * tile_f * param_bytes
                  + (4 << 20))
    vmem_limit = int(min(max(vmem_bytes, 16 << 20), 48 << 20))

    out2d = pl.pallas_call(
        _mog_kernel,
        out_shape=jax.ShapeDtypeStruct((B_pad, F_pad), out_dtype),
        grid_spec=pltpu.PrefetchScalarGridSpec(
            num_scalar_prefetch=0,
            grid=grid,
            in_specs=[
                pl.BlockSpec((1, tile_f), lambda i, j: (0, j)),        # mean
                pl.BlockSpec((1, tile_f), lambda i, j: (0, j)),        # std
                pl.BlockSpec((tile_b, tile_f), lambda i, j: (i, j)),   # noise
            ],
            out_specs=pl.BlockSpec((tile_b, tile_f), lambda i, j: (i, j)),
        ),
        compiler_params=pltpu.CompilerParams(
            dimension_semantics=("parallel", "parallel"),
            vmem_limit_bytes=vmem_limit,
        ),
    )(mean2d, std2d, noise2d)

    if B_pad != B or F_pad != F:
        out2d = out2d[:B, :F]
    return out2d.reshape(out_shape)


if __name__ == "__main__":
    key = jax.random.PRNGKey(0)
    k_mean, k_std, k_noise = jax.random.split(key, 3)

    # Params mirror the PyTorch module's init: std ~ U(-0.2, 0.2), mean ~ U(-1, 1).
    S, D = 8, 32
    noise_dim = (S, D)
    std = jax.random.uniform(k_std, noise_dim, jnp.float32, -0.2, 0.2)
    mean = jax.random.uniform(k_mean, noise_dim, jnp.float32, -1.0, 1.0)

    # 1) Tiny demo shape (batch=2): takes the plain-JAX fast path.
    noise_small = jax.random.normal(k_noise, (2,) + noise_dim, jnp.float32)
    out_small = jax.block_until_ready(mog_layer(mean, std, noise_small))
    ref_small = mean[None] + std[None] * noise_small
    assert out_small.shape == (2, S, D)
    assert jnp.allclose(out_small, ref_small, atol=1e-6, rtol=1e-6)

    # 2) Pallas path; batch not a multiple of 8 exercises the hardened row
    #    tiling (divisor/pad logic); F = 256 lanes -> unmasked full-lane stores.
    Bk = 4099
    noise_big = jax.random.normal(jax.random.PRNGKey(1), (Bk,) + noise_dim, jnp.float32)
    out_big = jax.block_until_ready(mog_layer(mean, std, noise_big))
    ref_big = mean[None] + std[None] * noise_big
    assert out_big.shape == (Bk, S, D)
    assert jnp.allclose(out_big, ref_big, atol=1e-6, rtol=1e-6)

    # 3) Pallas path with F = 120 (not a multiple of 128) -> exercises lane padding.
    nd2 = (5, 24)
    std2 = jax.random.uniform(k_std, nd2, jnp.float32, -0.2, 0.2)
    mean2 = jax.random.uniform(k_mean, nd2, jnp.float32, -1.0, 1.0)
    noise2 = jax.random.normal(jax.random.PRNGKey(2), (1000,) + nd2, jnp.float32)
    out2 = jax.block_until_ready(mog_layer(mean2, std2, noise2, min_pallas_bytes=0))
    ref2 = mean2[None] + std2[None] * noise2
    assert jnp.allclose(out2, ref2, atol=1e-6, rtol=1e-6)

    print("KERNEL_OK")
</pallas_src>

<mosaic_0001>
module attributes {stable_mosaic.version = 11 : i64} {
  func.func @_mog_kernel(%arg0: i32, %arg1: i32, %arg2: memref<1x256xf32, #tpu.memory_space<vmem>>, %arg3: memref<1x256xf32, #tpu.memory_space<vmem>>, %arg4: memref<1368x256xf32, #tpu.memory_space<vmem>>, %arg5: memref<1368x256xf32, #tpu.memory_space<vmem>>) attributes {dimension_semantics = [#tpu.dimension_semantics<parallel>, #tpu.dimension_semantics<parallel>], iteration_bounds = array<i64: 3, 1>, scalar_prefetch = 0 : i64, scratch_operands = 0 : i64, tpu.core_type = #tpu.core_type<tc>, window_params = [{transform_indices = @transform_0, window_bounds = array<i64: 1, 256>}, {transform_indices = @transform_1, window_bounds = array<i64: 1, 256>}, {transform_indices = @transform_2, window_bounds = array<i64: 1368, 256>}, {transform_indices = @transform_3, window_bounds = array<i64: 1368, 256>}]} {
    %c0 = arith.constant 0 : index
    %c0_0 = arith.constant 0 : index
    %0 = vector.load %arg2[%c0, %c0_0] : memref<1x256xf32, #tpu.memory_space<vmem>>, vector<1x256xf32>
    %c0_1 = arith.constant 0 : index
    %c0_2 = arith.constant 0 : index
    %1 = vector.load %arg3[%c0_1, %c0_2] : memref<1x256xf32, #tpu.memory_space<vmem>>, vector<1x256xf32>
    %c0_3 = arith.constant 0 : index
    %c0_4 = arith.constant 0 : index
    %2 = vector.load %arg4[%c0_3, %c0_4] : memref<1368x256xf32, #tpu.memory_space<vmem>>, vector<1368x256xf32>
    %3 = vector.broadcast %1 : vector<1x256xf32> to vector<1368x256xf32>
    %4 = arith.mulf %3, %2 : vector<1368x256xf32>
    %5 = vector.broadcast %0 : vector<1x256xf32> to vector<1368x256xf32>
    %6 = arith.addf %5, %4 : vector<1368x256xf32>
    %c0_5 = arith.constant 0 : index
    %c0_6 = arith.constant 0 : index
    %7 = vector.load %arg5[%c0_5, %c0_6] : memref<1368x256xf32, #tpu.memory_space<vmem>>, vector<1368x256xf32>
    tpu.vector_store %arg5[%c0_5, %c0_6], %6 {strides = array<i32>} : memref<1368x256xf32, #tpu.memory_space<vmem>>, vector<1368x256xf32>,
    return
  }
  func.func @transform_0(%arg0: i32, %arg1: i32) -> (i32, i32) {
    %c0_i32 = arith.constant 0 : i32
    %c0_i32_0 = arith.constant 0 : i32
    return %c0_i32, %arg1 : i32, i32
  }
  func.func @transform_1(%arg0: i32, %arg1: i32) -> (i32, i32) {
    %c0_i32 = arith.constant 0 : i32
    %c0_i32_0 = arith.constant 0 : i32
    return %c0_i32, %arg1 : i32, i32
  }
  func.func @transform_2(%arg0: i32, %arg1: i32) -> (i32, i32) {
    %c0_i32 = arith.constant 0 : i32
    return %arg0, %arg1 : i32, i32
  }
  func.func @transform_3(%arg0: i32, %arg1: i32) -> (i32, i32) {
    %c0_i32 = arith.constant 0 : i32
    return %arg0, %arg1 : i32, i32
  }
}

</mosaic_0001>

<bundles_post_ra>
// kernel: tpu_custom_call.1
= control target key start
LH: loop header
LB: loop body
LE: loop exit
PB: predicated region body
PF: predicated region fallthrough
CT: control target
= control target key end

     0   :  { %8 = vsyncpa [#allocation3], 0  ;;  %s3725_s0 = inlined_call_operand.hbm [shape: f32[1,256], index: 0, kind: input, shape index: {}]   ;;  %s3726_s1 = inlined_call_operand.hbm [shape: f32[1,256], index: 1, kind: input, shape index: {}]   ;;  %s3727_s2 = inlined_call_operand.hbm [shape: f32[4104,256], index: 2, kind: input, shape index: {}]   ;;  %s3728_s3 = inlined_call_operand.hbm [shape: f32[4104,256], index: 3, kind: output, shape index: {}]  }
   0x1   :  { %9 = vsyncpa [#allocation6], 0 }
   0x2   :  { %10 = vsyncpa [#allocation4], 0 }
   0x3   :  { %12 = vsyncpa [#allocation4 + $0x1], 0  ;;  %s2088_s12 = smov 0   ;;  %s2090_s13 = smov 0  }
   0x4   :  { %s2092_s14 = smov 0   ;;  %s2094_s15 = smov 0  }
   0x5   :  { %s2096_s16 = smov 0   ;;  %s2098_s17 = smov 0  }
   0x6 LB: > { %s2119_s18 = sadd.s32 4294967295, %s2058_s17   ;;  %s1773_s19 = sadd.s32 4294967294, %s2058_s17   ;;  %s2058_s17 = sphi %s2098_s17, %s18_s17   ;;  %s2054_s16 = sphi %s2096_s16, %s3754_s16   ;;  %s2050_s15 = sphi %s2094_s15, %s3753_s15   ;;  %s2046_s14 = sphi %s2092_s14, %s3752_s14   ;;  %s2042_s13 = sphi %s2090_s13, %s3751_s13   ;;  %s2038_s12 = sphi %s2088_s12, %s3750_s12  }
   0x7   : > { %s91_s20 = sadd.s32 1, %s2046_s14  ;;  %p98_p0 = scmp.ne.s32.totalorder %s2046_s14, %s2042_s13 }
   0x8   : > { %p99_p1 = scmp.eq.s32.totalorder %s2058_s17, 0  ;;  %p104_p2 = scmp.ne.s32.totalorder %s2042_s13, %s2038_s12 }
   0x9   : > { %p3729_p3 = scmp.eq.s32.totalorder %s2119_s18, 0  ;;  %p130_p4 = scmp.eq.s32.totalorder %s2119_s18, 2 }
   0xa   : > { %p2130_p5 = por %p99_p1, %p98_p0  ;;  %p136_p6 = scmp.eq.s32.totalorder %s1773_s19, 2 }
   0xb   : > { %p2136_p7 = por %p3729_p3, %p104_p2  ;;  %p2140_p8 = por %p130_p4, %p98_p0 }
   0xc   : > { %p2144_p9 = por %p136_p6, %p104_p2  ;;  %p1774_p10 = scmp.ge.s32.totalorder %s2058_s17, 1 }
   0xd   : > { %s3735_s22 = scalar_select %p2136_p7, 1, 0 }
   0xe   : > { %s3736_s23 = scalar_select %p2140_p8, 1, 0 }
   0xf   : > { %s3737_s24 = scalar_select %p2144_p9, 1, 0 }
  0x10   : > { %p143_p11 = scmp.lt.s32.totalorder %s2058_s17, 4  ;;  %s2060_s26 = smov [#allocation2]  }
  0x11   : > { %s159_s27 = sshll.u32 %s2060_s26, 4  ;;  %p1824_p13 = scmp.lt.s32.totalorder %s2058_s17, 3  ;;  %s160_s27 = int_to_ptr.vmem [resolvable:$true] %s159_s27 }
  0x12   : > { %p2150_p12 = pnand %p1774_p10, %p143_p11  ;;  %s2061_s29 = smov [#allocation5]  }
  0x13   : > { %p2159_p1 = pnand %p1824_p13, %p2130_p5  ;;  %s173_s30 = sshll.u32 %s2061_s29, 4  ;;  %s2169_s30 = int_to_ptr.vmem [resolvable:$true] %s173_s30 }
  0x14   : > { %s3738_s25 = scalar_select %p2150_p12, 1, 0 }
  0x15   : > { %p1807_p0 = pneg %p2150_p12  ;;  %s1882_s7 = scalar_lea.hbm %s3725_s0, 32 }
  0x16   : > { %s3739_s28 = scalar_select %p2159_p1, 1, 0 }
  0x17   : > { %p2165_p2 = pnand %p1807_p0, %p3729_p3  ;;  %p1883_p4 = scmp.ne.s32.totalorder %s3725_s0, %s1882_s7 }
  0x18   : > { %p1889_p11 = scmp.lt.u32.totalorder %s1882_s7, %s3725_s0 }
  0x19   : > { %p1884_p5 = pneg %p2165_p2 }
  0x1b   : > { %p1885_p6 = pnand %p1884_p5, %p1883_p4 }
  0x1d   : > { %p1886_p10 = pneg %p1885_p6 }
  0x1f   : > { %p1891_p13 = pnand %p1889_p11, %p1886_p10 }
  0x21   : > { %1894 = shalt.err (!%p1891_p13)
}
  0x22   : > { %s1895_s19 = scalar_lea.vmem %s160_s27, 32  ;;  %p1903_p8 = scmp.lt.s32.totalorder %s160_s27, %s160_s27 }
  0x23   : > { %p1896_p0 = scmp.ne.s32.totalorder %s160_s27, %s1895_s19  ;;  %p1904_p7 = scmp.lt.s32.totalorder %s1895_s19, %s1895_s19 }
  0x25   : > { %p1898_p3 = pnand %p1896_p0, %p1884_p5  ;;  %p1905_p12 = por %p1904_p7, %p1903_p8 }
  0x27   : > { %p1899_p9 = pneg %p1898_p3 }
  0x29   : > { %p1906_p1 = pnand %p1905_p12, %p1899_p9 }
  0x2b   : > { %1909 = shalt.err (!%p1906_p1)
}
  0x2c   : > { %1810 = dma.hbm_to_vmem [thread:$0]  (!%p2165_p2), %s3725_s0, 32, %s160_s27, [#allocation3]  }
  0x2d   : > { %s1910_s6 = scalar_lea.hbm %s3726_s1, 32 }
  0x2e   : > { %p1911_p3 = scmp.ne.s32.totalorder %s3726_s1, %s1910_s6  ;;  %p1917_p9 = scmp.lt.u32.totalorder %s1910_s6, %s3726_s1 }
  0x30   : > { %p1913_p7 = pnand %p1911_p3, %p1884_p5 }
  0x32   : > { %p1914_p8 = pneg %p1913_p7 }
  0x34   : > { %p1919_p12 = pnand %p1917_p9, %p1914_p8 }
  0x36   : > { %1922 = shalt.err (!%p1919_p12)
}
  0x37   : > { %s1923_s27 = scalar_lea.vmem %s2169_s30, 32  ;;  %p1931_p10 = scmp.lt.s32.totalorder %s2169_s30, %s2169_s30 }
  0x38   : > { %p1924_p1 = scmp.ne.s32.totalorder %s2169_s30, %s1923_s27  ;;  %p1932_p11 = scmp.lt.s32.totalorder %s1923_s27, %s1923_s27 }
  0x3a   : > { %p1926_p4 = pnand %p1924_p1, %p1884_p5  ;;  %p1933_p13 = por %p1932_p11, %p1931_p10 }
  0x3c   : > { %p1927_p6 = pneg %p1926_p4 }
  0x3e   : > { %p1934_p0 = pnand %p1933_p13, %p1927_p6 }
  0x40   : > { %1937 = shalt.err (!%p1934_p0)
}
  0x41   : > { %1813 = dma.hbm_to_vmem [thread:$0]  (!%p2165_p2), %s3726_s1, 32, %s2169_s30, [#allocation6]  }
  0x42   : > { %s30_s21 = sadd.s32 1, %s2054_s16  ;;  %s184_s26 = sand.u32 1, %s2058_s17  }
  0x43   : > { %p32_p5 = scmp.ge.s32.totalorder %s30_s21, 3  ;;  %s186_s29 = sand.u32 1, %s2046_s14  }
  0x44   : > { %s1791_s5 = smul.u32 43776, %s2054_s16  ;;  %s2238_s11 = scalar_lea.sflag [#allocation3], %s184_s26 }
  0x45   : > { %s3756_s21 = smov (%p32_p5, %s30_s21), 0  ;;  %s1793_s4 = smul.u32 2736, %s186_s29 }
  0x46   : > { %s2227_s8 = scalar_lea.hbm %s3727_s2, %s1791_s5  ;;  %s86_s30 = ssub.s32 %s2054_s16, %s3756_s21 }
  0x47   : > { %p89_p2 = scmp.eq.s32.totalorder %s86_s30, 0  ;;  %s188_s9 = scalar_lea.vmem [#allocation7], %s1793_s4 }
  0x48   : > { %s198_s10 = sshll.u32 %s188_s9, 4  ;;  %s1938_s19 = scalar_lea.hbm %s2227_s8, 43776  ;;  %s2236_s10 = int_to_ptr.vmem [resolvable:$true] %s198_s10 }
  0x49   : > { %s2234_s27 = scalar_select %p89_p2, %s2046_s14, %s91_s20  }
  0x4a   : > { %p1939_p3 = scmp.ne.s32.totalorder %s2227_s8, %s1938_s19  ;;  %p3741_p7 = scmp.ne.s32.totalorder %s3739_s28, 0 }
  0x4b   : > { %s1943_s4 = scalar_lea.hbm %s3727_s2, 131328  ;;  %p1944_p1 = scmp.lt.u32.totalorder %s2227_s8, %s3727_s2 }
  0x4c   : > { %p1940_p8 = pneg %p3741_p7  ;;  %p1945_p4 = scmp.lt.u32.totalorder %s1943_s4, %s1938_s19 }
  0x4d   : > { %p1947_p10 = scmp.lt.u32.totalorder %s1938_s19, %s2227_s8 }
  0x4e   : > { %p1941_p9 = pnand %p1940_p8, %p1939_p3  ;;  %p1946_p6 = por %p1945_p4, %p1944_p1 }
  0x50   : > { %p1942_p12 = pneg %p1941_p9  ;;  %p1948_p11 = por %p1947_p10, %p1946_p6 }
  0x52   : > { %p1949_p13 = pnand %p1948_p11, %p1942_p12 }
  0x54   : > { %1952 = shalt.err (!%p1949_p13)
}
  0x55   : > { %s1953_s20 = scalar_lea.vmem %s2236_s10, 43776  ;;  %s2062_s26 = smov [#allocation7]  }
  0x56   : > { %p1954_p0 = scmp.ne.s32.totalorder %s2236_s10, %s1953_s20  ;;  %s1958_s30 = sshll.u32 %s2062_s26, 4  ;;  %s1959_s30 = int_to_ptr.vmem [resolvable:$false] %s1958_s30 }
  0x57   : > { %s1960_s9 = scalar_lea.vmem %s1959_s30, 87552  ;;  %p1961_p3 = scmp.lt.s32.totalorder %s2236_s10, %s1959_s30 }
  0x58   : > { %p1956_p5 = pnand %p1954_p0, %p1940_p8  ;;  %p1962_p9 = scmp.lt.s32.totalorder %s1960_s9, %s1953_s20 }
  0x5a   : > { %p1957_p2 = pneg %p1956_p5  ;;  %p1963_p1 = por %p1962_p9, %p1961_p3 }
  0x5c   : > { %p1964_p4 = pnand %p1963_p1, %p1957_p2 }
  0x5e   : > { %1967 = shalt.err (!%p1964_p4)
}
  0x5f   : > { %s2063_s19 = smov 256   ;;  %s2064_s29 = smov 16  }
  0x60   : > { %1817 = dma.hbm_to_vmem [thread:$0]  (!%p3741_p7), %s2227_s8, 43776, %s2236_s10, %s2238_s11, %s2063_s19, %s2063_s19, %s2064_s29  }
  0x61   : > { %p3742_p8 = scmp.ne.s32.totalorder %s3738_s25, 0 }
  0x62   : > { %p3743_p12 = scmp.eq.s32.totalorder (!%p3742_p8), %s2119_s18, 0 }
  0x63   : > { %210 = sbr.rel (%p3742_p8) target bundleno = 354 (0x162), region = 32 }
  0x6a   : > { %2021 = dma.done.wait (%p3743_p12), [#allocation3], 32   ;;  %p3744_p6 = pmov %p3743_p12 }
  0x6c   : > { %2023 = vsyncadd (%p3744_p6), [#allocation3], 4294967264  ;;  %p3745_p10 = pmov %p3744_p6 }
  0x6d   : > { %p3746_p11 = pmov %p3744_p6 }
  0x6e   : > { %2025 = dma.done.wait (%p3745_p10), [#allocation6], 32  }
  0x6f   : > { %2027 = vsyncadd (%p3746_p11), [#allocation6], 4294967264  ;;  %s220_s28 = sand.u32 1, %s2119_s18   ;;  %s222_s8 = sand.u32 1, %s2042_s13  }
  0x70   : > { %s2280_s25 = smul.u32 2736, %s222_s8  ;;  %s221_s10 = scalar_lea.sflag [#allocation3], %s220_s28 }
  0x71   : > { %p3747_p7 = scmp.ne.s32.totalorder %s3735_s22, 0 }
  0x72   : > { %s2283_s11 = scalar_lea.vmem [#allocation7], %s2280_s25 }
  0x73   : > { %2029 = dma.done.wait (%p3747_p7), %s221_s10, 43776  }
  0x74   : > { %2031 = vsyncadd (%p3747_p7), %s221_s10, 4294923520  ;;  %v598_v0 = vlaneseq  ;;  %v253_v4 = vld [vmem:[#allocation2] sm:$0x3]  ;;  %v254_v5 = vld [vmem:[#allocation5] sm:$0x3]  ;;  %s2330_s18 = scalar_lea.vmem [#allocation8], %s2280_s25 }
  0x75   : > { %v255_v6 = vld [vmem:[%s2283_s11] sm:$0xff]  ;;  %v256_v9 = vld [vmem:[%s2283_s11 + $0x8] sm:$0xff]  ;;  %v257_v12 = vld [vmem:[%s2283_s11 + $0x10] sm:$0xff]  ;;  %s1792_s22 = smul.u32 43776, %s2050_s15  ;;  %s1662_s5 = sshll.u32 %s2330_s18, 4  ;;  %s3667_s5 = int_to_ptr.vmem [resolvable:$true] %s1662_s5 }
  0x76   : > { %v599_v1 = vshrl.u32 %v598_v0, 7  ;;  %v258_v13 = vld [vmem:[%s2283_s11 + $0x18] sm:$0xff]  ;;  %v259_v14 = vld [vmem:[%s2283_s11 + $0x20] sm:$0xff]  ;;  %v260_v15 = vld [vmem:[%s2283_s11 + $0x28] sm:$0xff]  ;;  %s3679_s7 = scalar_lea.sflag [#allocation4], %s222_s8  ;;  %s1968_s20 = scalar_lea.vmem %s3667_s5, 43776 }
  0x77   : > { %v261_v16 = vld [vmem:[%s2283_s11 + $0x30] sm:$0xff]  ;;  %v262_v21 = vld [vmem:[%s2283_s11 + $0x38] sm:$0xff]  ;;  %v263_v22 = vld [vmem:[%s2283_s11 + $0x40] sm:$0xff]  ;;  %s3665_s6 = scalar_lea.hbm %s3728_s3, %s1792_s22  ;;  %p1969_p13 = scmp.ne.s32.totalorder %s3667_s5, %s1968_s20 }
  0x78   : > { %v600_v2 = vsub.s32 0, %v599_v1  ;;  %v604_v3 = vsub.s32 1, %v599_v1  ;;  %v264_v23 = vld [vmem:[%s2283_s11 + $0x48] sm:$0xff]  ;;  %v265_v28 = vld [vmem:[%s2283_s11 + $0x50] sm:$0xff]  ;;  %v266_v29 = vld [vmem:[%s2283_s11 + $0x58] sm:$0xff]  ;;  %p3748_p0 = scmp.ne.s32.totalorder %s3736_s23, 0 }
  0x79   : > { %v267_v30 = vld [vmem:[%s2283_s11 + $0x60] sm:$0xff]  ;;  %v268_v35 = vld [vmem:[%s2283_s11 + $0x68] sm:$0xff]  ;;  %v269_v36 = vld [vmem:[%s2283_s11 + $0x70] sm:$0xff]  ;;  %s2065_s26 = smov [#allocation8]  }
  0x7a   : > { %v2290_v7 = vrot.slane %v254_v5, %v600_v2  ;;  %v2292_v8 = vrot.slane %v253_v4, %v600_v2  ;;  %v2295_v10 = vrot.slane %v254_v5, %v604_v3  ;;  %v2297_v11 = vrot.slane %v253_v4, %v604_v3  ;;  %v270_v37 = vld [vmem:[%s2283_s11 + $0x78] sm:$0xff]  ;;  %v271_v46 = vld [vmem:[%s2283_s11 + $0x80] sm:$0xff]  ;;  %v272_v47 = vld [vmem:[%s2283_s11 + $0x88] sm:$0xff]  ;;  %p1970_p5 = pnand %p1969_p13, %p3748_p0  ;;  %s1972_s30 = sshll.u32 %s2065_s26, 4  ;;  %s1973_s30 = int_to_ptr.vmem [resolvable:$false] %s1972_s30 }
  0x7b   : > { %v273_v52 = vld [vmem:[%s2283_s11 + $0x90] sm:$0xff]  ;;  %v274_v53 = vld [vmem:[%s2283_s11 + $0x98] sm:$0xff]  ;;  %v275_v54 = vld [vmem:[%s2283_s11 + $0xa0] sm:$0xff]  ;;  %s1974_s9 = scalar_lea.vmem %s1973_s30, 87552  ;;  %p1975_p3 = scmp.lt.s32.totalorder %s3667_s5, %s1973_s30 }
  0x7c   : > { %v608_v17 = vmul.f32 %v2290_v7, %v255_v6  ;;  %v609_v18 = vmul.f32 %v2295_v10, %v256_v9  ;;  %v610_v19 = vmul.f32 %v2290_v7, %v257_v12  ;;  %v611_v20 = vmul.f32 %v2295_v10, %v258_v13  ;;  %v276_v59 = vld [vmem:[%s2283_s11 + $0xa8] sm:$0xff]  ;;  %v277_v60 = vld [vmem:[%s2283_s11 + $0xb0] sm:$0xff]  ;;  %v278_v61 = vld [vmem:[%s2283_s11 + $0xb8] sm:$0xff]  ;;  %p1971_p2 = pneg %p1970_p5  ;;  %p1976_p9 = scmp.lt.s32.totalorder %s1974_s9, %s1968_s20 }
  0x7d   : > { %v612_v24 = vmul.f32 %v2290_v7, %v259_v14  ;;  %v613_v25 = vmul.f32 %v2295_v10, %v260_v15  ;;  %v614_v26 = vmul.f32 %v2290_v7, %v261_v16  ;;  %v615_v27 = vmul.f32 %v2295_v10, %v262_v21  ;;  %v279_v6 = vld [vmem:[%s2283_s11 + $0xc0] sm:$0xff]  ;;  %v280_v9 = vld [vmem:[%s2283_s11 + $0xc8] sm:$0xff]  ;;  %v281_v16 = vld [vmem:[%s2283_s11 + $0xd0] sm:$0xff] }
  0x7e   : > { %v961_v31 = vadd.f32 %v2292_v8, %v608_v17  ;;  %v962_v32 = vadd.f32 %v2297_v11, %v609_v18  ;;  %v963_v33 = vadd.f32 %v2292_v8, %v610_v19  ;;  %v964_v34 = vadd.f32 %v2297_v11, %v611_v20  ;;  %v282_v17 = vld [vmem:[%s2283_s11 + $0xd8] sm:$0xff]  ;;  %v283_v18 = vld [vmem:[%s2283_s11 + $0xe0] sm:$0xff]  ;;  %p1977_p1 = por %p1976_p9, %p1975_p3 }
  0x7f   : > { %v965_v38 = vadd.f32 %v2292_v8, %v612_v24  ;;  %v966_v39 = vadd.f32 %v2297_v11, %v613_v25  ;;  %v967_v40 = vadd.f32 %v2292_v8, %v614_v26  ;;  %v968_v41 = vadd.f32 %v2297_v11, %v615_v27  ;;  %v285_v24 = vld [vmem:[%s2283_s11 + $0xf0] sm:$0xff]  ;;  %v286_v25 = vld [vmem:[%s2283_s11 + $0xf8] sm:$0xff] }
  0x80   : > { %1303 = vst [vmem:[%s2330_s18] sm:$0xff] %v961_v31  ;;  %1304 = vst [vmem:[%s2330_s18 + $0x8] sm:$0xff] %v962_v32  ;;  %v616_v42 = vmul.f32 %v2290_v7, %v263_v22  ;;  %v617_v43 = vmul.f32 %v2295_v10, %v264_v23  ;;  %v618_v44 = vmul.f32 %v2290_v7, %v265_v28  ;;  %v284_v23 = vld [vmem:[%s2283_s11 + $0xe8] sm:$0xff]  ;;  %p1978_p4 = pnand %p1977_p1, %p1971_p2 }
  0x81   : > { %1305 = vst [vmem:[%s2330_s18 + $0x10] sm:$0xff] %v963_v33  ;;  %1306 = vst [vmem:[%s2330_s18 + $0x18] sm:$0xff] %v964_v34  ;;  %v619_v45 = vmul.f32 %v2295_v10, %v266_v29  ;;  %v620_v48 = vmul.f32 %v2290_v7, %v267_v30  ;;  %v621_v49 = vmul.f32 %v2295_v10, %v268_v35  ;;  %v287_v34 = vld [vmem:[%s2283_s11 + $0x100] sm:$0xff]  ;;  %v288_v35 = vld [vmem:[%s2283_s11 + $0x108] sm:$0xff] }
  0x82   : > { %1307 = vst [vmem:[%s2330_s18 + $0x20] sm:$0xff] %v965_v38  ;;  %1308 = vst [vmem:[%s2330_s18 + $0x28] sm:$0xff] %v966_v39  ;;  %v622_v50 = vmul.f32 %v2290_v7, %v269_v36  ;;  %v623_v51 = vmul.f32 %v2295_v10, %v270_v37  ;;  %v969_v55 = vadd.f32 %v2292_v8, %v616_v42  ;;  %v291_v42 = vld [vmem:[%s2283_s11 + $0x120] sm:$0xff] }
  0x83   : > { %1309 = vst [vmem:[%s2330_s18 + $0x30] sm:$0xff] %v967_v40  ;;  %1310 = vst [vmem:[%s2330_s18 + $0x38] sm:$0xff] %v968_v41  ;;  %v970_v56 = vadd.f32 %v2297_v11, %v617_v43  ;;  %v971_v57 = vadd.f32 %v2292_v8, %v618_v44  ;;  %v972_v58 = vadd.f32 %v2297_v11, %v619_v45  ;;  %v289_v40 = vld [vmem:[%s2283_s11 + $0x110] sm:$0xff]  ;;  %v290_v41 = vld [vmem:[%s2283_s11 + $0x118] sm:$0xff] }
  0x84   : > { %v973_v62 = vadd.f32 %v2292_v8, %v620_v48  ;;  %v974_v63 = vadd.f32 %v2297_v11, %v621_v49  ;;  %v975_v0 = vadd.f32 %v2292_v8, %v622_v50  ;;  %v976_v1 = vadd.f32 %v2297_v11, %v623_v51  ;;  %1311 = vst [vmem:[%s2330_s18 + $0x40] sm:$0xff] %v969_v55  ;;  %v293_v48 = vld [vmem:[%s2283_s11 + $0x130] sm:$0xff]  ;;  %v294_v49 = vld [vmem:[%s2283_s11 + $0x138] sm:$0xff] }
  0x85   : > { %1312 = vst [vmem:[%s2330_s18 + $0x48] sm:$0xff] %v970_v56  ;;  %1313 = vst [vmem:[%s2330_s18 + $0x50] sm:$0xff] %v971_v57  ;;  %v624_v2 = vmul.f32 %v2290_v7, %v271_v46  ;;  %v625_v3 = vmul.f32 %v2295_v10, %v272_v47  ;;  %v626_v4 = vmul.f32 %v2290_v7, %v273_v52  ;;  %v292_v47 = vld [vmem:[%s2283_s11 + $0x128] sm:$0xff] }
  0x86   : > { %1314 = vst [vmem:[%s2330_s18 + $0x58] sm:$0xff] %v972_v58  ;;  %v627_v5 = vmul.f32 %v2295_v10, %v274_v53  ;;  %1315 = vst [vmem:[%s2330_s18 + $0x60] sm:$0xff] %v973_v62  ;;  %v628_v12 = vmul.f32 %v2290_v7, %v275_v54  ;;  %v629_v13 = vmul.f32 %v2295_v10, %v276_v59  ;;  %v295_v58 = vld [vmem:[%s2283_s11 + $0x140] sm:$0xff]  ;;  %v296_v59 = vld [vmem:[%s2283_s11 + $0x148] sm:$0xff] }
  0x87   : > { %1316 = vst [vmem:[%s2330_s18 + $0x68] sm:$0xff] %v974_v63  ;;  %1317 = vst [vmem:[%s2330_s18 + $0x70] sm:$0xff] %v975_v0  ;;  %v630_v14 = vmul.f32 %v2290_v7, %v277_v60  ;;  %v631_v15 = vmul.f32 %v2295_v10, %v278_v61  ;;  %v977_v19 = vadd.f32 %v2292_v8, %v624_v2  ;;  %v297_v0 = vld [vmem:[%s2283_s11 + $0x150] sm:$0xff]  ;;  %v299_v2 = vld [vmem:[%s2283_s11 + $0x160] sm:$0xff] }
  0x88   : > { %1318 = vst [vmem:[%s2330_s18 + $0x78] sm:$0xff] %v976_v1  ;;  %v978_v20 = vadd.f32 %v2297_v11, %v625_v3  ;;  %v979_v21 = vadd.f32 %v2292_v8, %v626_v4  ;;  %v980_v22 = vadd.f32 %v2297_v11, %v627_v5  ;;  %v981_v26 = vadd.f32 %v2292_v8, %v628_v12  ;;  %v298_v1 = vld [vmem:[%s2283_s11 + $0x158] sm:$0xff]  ;;  %v301_v12 = vld [vmem:[%s2283_s11 + $0x170] sm:$0xff] }
  0x89   : > { %v982_v27 = vadd.f32 %v2297_v11, %v629_v13  ;;  %v983_v28 = vadd.f32 %v2292_v8, %v630_v14  ;;  %v984_v29 = vadd.f32 %v2297_v11, %v631_v15  ;;  %1319 = vst [vmem:[%s2330_s18 + $0x80] sm:$0xff] %v977_v19  ;;  %v632_v30 = vmul.f32 %v2290_v7, %v279_v6  ;;  %v302_v13 = vld [vmem:[%s2283_s11 + $0x178] sm:$0xff] }
  0x8a   : > { %1320 = vst [vmem:[%s2330_s18 + $0x88] sm:$0xff] %v978_v20  ;;  %1321 = vst [vmem:[%s2330_s18 + $0x90] sm:$0xff] %v979_v21  ;;  %v633_v31 = vmul.f32 %v2295_v10, %v280_v9  ;;  %v634_v32 = vmul.f32 %v2290_v7, %v281_v16  ;;  %v635_v33 = vmul.f32 %v2295_v10, %v282_v17  ;;  %v300_v9 = vld [vmem:[%s2283_s11 + $0x168] sm:$0xff] }
  0x8b   : > { %1322 = vst [vmem:[%s2330_s18 + $0x98] sm:$0xff] %v980_v22  ;;  %1323 = vst [vmem:[%s2330_s18 + $0xa0] sm:$0xff] %v981_v26  ;;  %v636_v36 = vmul.f32 %v2290_v7, %v283_v18  ;;  %v637_v37 = vmul.f32 %v2295_v10, %v284_v23  ;;  %v638_v38 = vmul.f32 %v2290_v7, %v285_v24  ;;  %v303_v22 = vld [vmem:[%s2283_s11 + $0x180] sm:$0xff]  ;;  %v304_v23 = vld [vmem:[%s2283_s11 + $0x188] sm:$0xff] }
  0x8c   : > { %1324 = vst [vmem:[%s2330_s18 + $0xa8] sm:$0xff] %v982_v27  ;;  %1325 = vst [vmem:[%s2330_s18 + $0xb0] sm:$0xff] %v983_v28  ;;  %v639_v39 = vmul.f32 %v2295_v10, %v286_v25  ;;  %v985_v43 = vadd.f32 %v2292_v8, %v632_v30  ;;  %v986_v44 = vadd.f32 %v2297_v11, %v633_v31  ;;  %v305_v28 = vld [vmem:[%s2283_s11 + $0x190] sm:$0xff]  ;;  %v307_v30 = vld [vmem:[%s2283_s11 + $0x1a0] sm:$0xff] }
  0x8d   : > { %1326 = vst [vmem:[%s2330_s18 + $0xb8] sm:$0xff] %v984_v29  ;;  %v987_v45 = vadd.f32 %v2292_v8, %v634_v32  ;;  %v988_v46 = vadd.f32 %v2297_v11, %v635_v33  ;;  %v989_v50 = vadd.f32 %v2292_v8, %v636_v36  ;;  %v990_v51 = vadd.f32 %v2297_v11, %v637_v37  ;;  %v306_v29 = vld [vmem:[%s2283_s11 + $0x198] sm:$0xff]  ;;  %v309_v36 = vld [vmem:[%s2283_s11 + $0x1b0] sm:$0xff] }
  0x8e   : > { %v991_v52 = vadd.f32 %v2292_v8, %v638_v38  ;;  %v992_v53 = vadd.f32 %v2297_v11, %v639_v39  ;;  %1327 = vst [vmem:[%s2330_s18 + $0xc0] sm:$0xff] %v985_v43  ;;  %1328 = vst [vmem:[%s2330_s18 + $0xc8] sm:$0xff] %v986_v44  ;;  %v640_v54 = vmul.f32 %v2290_v7, %v287_v34  ;;  %v310_v37 = vld [vmem:[%s2283_s11 + $0x1b8] sm:$0xff] }
  0x8f   : > { %1329 = vst [vmem:[%s2330_s18 + $0xd0] sm:$0xff] %v987_v45  ;;  %1330 = vst [vmem:[%s2330_s18 + $0xd8] sm:$0xff] %v988_v46  ;;  %v641_v55 = vmul.f32 %v2295_v10, %v288_v35  ;;  %v642_v56 = vmul.f32 %v2290_v7, %v289_v40  ;;  %v643_v57 = vmul.f32 %v2295_v10, %v290_v41  ;;  %v308_v35 = vld [vmem:[%s2283_s11 + $0x1a8] sm:$0xff]  ;;  %v311_v46 = vld [vmem:[%s2283_s11 + $0x1c0] sm:$0xff] }
  0x90   : > { %1331 = vst [vmem:[%s2330_s18 + $0xe0] sm:$0xff] %v989_v50  ;;  %1332 = vst [vmem:[%s2330_s18 + $0xe8] sm:$0xff] %v990_v51  ;;  %v644_v60 = vmul.f32 %v2290_v7, %v291_v42  ;;  %v645_v61 = vmul.f32 %v2295_v10, %v292_v47  ;;  %v646_v62 = vmul.f32 %v2290_v7, %v293_v48  ;;  %v312_v47 = vld [vmem:[%s2283_s11 + $0x1c8] sm:$0xff] }
  0x91   : > { %1333 = vst [vmem:[%s2330_s18 + $0xf0] sm:$0xff] %v991_v52  ;;  %1334 = vst [vmem:[%s2330_s18 + $0xf8] sm:$0xff] %v992_v53  ;;  %v647_v63 = vmul.f32 %v2295_v10, %v294_v49  ;;  %v993_v3 = vadd.f32 %v2292_v8, %v640_v54  ;;  %v994_v4 = vadd.f32 %v2297_v11, %v641_v55  ;;  %v313_v52 = vld [vmem:[%s2283_s11 + $0x1d0] sm:$0xff]  ;;  %v314_v53 = vld [vmem:[%s2283_s11 + $0x1d8] sm:$0xff] }
  0x92   : > { %v995_v5 = vadd.f32 %v2292_v8, %v642_v56  ;;  %v996_v6 = vadd.f32 %v2297_v11, %v643_v57  ;;  %v997_v14 = vadd.f32 %v2292_v8, %v644_v60  ;;  %v998_v15 = vadd.f32 %v2297_v11, %v645_v61  ;;  %v315_v54 = vld [vmem:[%s2283_s11 + $0x1e0] sm:$0xff]  ;;  %v317_v60 = vld [vmem:[%s2283_s11 + $0x1f0] sm:$0xff]  ;;  %v318_v61 = vld [vmem:[%s2283_s11 + $0x1f8] sm:$0xff] }
  0x93   : > { %v999_v16 = vadd.f32 %v2292_v8, %v646_v62  ;;  %v1000_v17 = vadd.f32 %v2297_v11, %v647_v63  ;;  %1335 = vst [vmem:[%s2330_s18 + $0x100] sm:$0xff] %v993_v3  ;;  %1336 = vst [vmem:[%s2330_s18 + $0x108] sm:$0xff] %v994_v4  ;;  %v648_v18 = vmul.f32 %v2290_v7, %v295_v58 }
  0x94   : > { %1337 = vst [vmem:[%s2330_s18 + $0x110] sm:$0xff] %v995_v5  ;;  %1338 = vst [vmem:[%s2330_s18 + $0x118] sm:$0xff] %v996_v6  ;;  %v649_v19 = vmul.f32 %v2295_v10, %v296_v59  ;;  %v650_v20 = vmul.f32 %v2290_v7, %v297_v0  ;;  %v651_v21 = vmul.f32 %v2295_v10, %v298_v1  ;;  %v316_v59 = vld [vmem:[%s2283_s11 + $0x1e8] sm:$0xff]  ;;  %v319_v6 = vld [vmem:[%s2283_s11 + $0x200] sm:$0xff] }
  0x95   : > { %1339 = vst [vmem:[%s2330_s18 + $0x120] sm:$0xff] %v997_v14  ;;  %1340 = vst [vmem:[%s2330_s18 + $0x128] sm:$0xff] %v998_v15  ;;  %v652_v24 = vmul.f32 %v2290_v7, %v299_v2  ;;  %v653_v25 = vmul.f32 %v2295_v10, %v300_v9  ;;  %v654_v26 = vmul.f32 %v2290_v7, %v301_v12  ;;  %v320_v9 = vld [vmem:[%s2283_s11 + $0x208] sm:$0xff] }
  0x96   : > { %1341 = vst [vmem:[%s2330_s18 + $0x130] sm:$0xff] %v999_v16  ;;  %1342 = vst [vmem:[%s2330_s18 + $0x138] sm:$0xff] %v1000_v17  ;;  %v655_v27 = vmul.f32 %v2295_v10, %v302_v13  ;;  %v1001_v31 = vadd.f32 %v2292_v8, %v648_v18  ;;  %v1002_v32 = vadd.f32 %v2297_v11, %v649_v19  ;;  %v321_v16 = vld [vmem:[%s2283_s11 + $0x210] sm:$0xff]  ;;  %v322_v17 = vld [vmem:[%s2283_s11 + $0x218] sm:$0xff] }
  0x97   : > { %v1003_v33 = vadd.f32 %v2292_v8, %v650_v20  ;;  %v1004_v34 = vadd.f32 %v2297_v11, %v651_v21  ;;  %v1005_v38 = vadd.f32 %v2292_v8, %v652_v24  ;;  %v1006_v39 = vadd.f32 %v2297_v11, %v653_v25  ;;  %v323_v18 = vld [vmem:[%s2283_s11 + $0x220] sm:$0xff]  ;;  %v325_v24 = vld [vmem:[%s2283_s11 + $0x230] sm:$0xff]  ;;  %v326_v25 = vld [vmem:[%s2283_s11 + $0x238] sm:$0xff] }
  0x98   : > { %v1007_v40 = vadd.f32 %v2292_v8, %v654_v26  ;;  %v1008_v41 = vadd.f32 %v2297_v11, %v655_v27  ;;  %1343 = vst [vmem:[%s2330_s18 + $0x140] sm:$0xff] %v1001_v31  ;;  %1344 = vst [vmem:[%s2330_s18 + $0x148] sm:$0xff] %v1002_v32  ;;  %v656_v42 = vmul.f32 %v2290_v7, %v303_v22 }
  0x99   : > { %1345 = vst [vmem:[%s2330_s18 + $0x150] sm:$0xff] %v1003_v33  ;;  %1346 = vst [vmem:[%s2330_s18 + $0x158] sm:$0xff] %v1004_v34  ;;  %v657_v43 = vmul.f32 %v2295_v10, %v304_v23  ;;  %v658_v44 = vmul.f32 %v2290_v7, %v305_v28  ;;  %v659_v45 = vmul.f32 %v2295_v10, %v306_v29  ;;  %v324_v23 = vld [vmem:[%s2283_s11 + $0x228] sm:$0xff]  ;;  %v327_v34 = vld [vmem:[%s2283_s11 + $0x240] sm:$0xff] }
  0x9a   : > { %1347 = vst [vmem:[%s2330_s18 + $0x160] sm:$0xff] %v1005_v38  ;;  %1348 = vst [vmem:[%s2330_s18 + $0x168] sm:$0xff] %v1006_v39  ;;  %v660_v48 = vmul.f32 %v2290_v7, %v307_v30  ;;  %v661_v49 = vmul.f32 %v2295_v10, %v308_v35  ;;  %v662_v50 = vmul.f32 %v2290_v7, %v309_v36  ;;  %v328_v35 = vld [vmem:[%s2283_s11 + $0x248] sm:$0xff] }
  0x9b   : > { %1349 = vst [vmem:[%s2330_s18 + $0x170] sm:$0xff] %v1007_v40  ;;  %1350 = vst [vmem:[%s2330_s18 + $0x178] sm:$0xff] %v1008_v41  ;;  %v663_v51 = vmul.f32 %v2295_v10, %v310_v37  ;;  %v1009_v55 = vadd.f32 %v2292_v8, %v656_v42  ;;  %v1010_v56 = vadd.f32 %v2297_v11, %v657_v43  ;;  %v329_v40 = vld [vmem:[%s2283_s11 + $0x250] sm:$0xff]  ;;  %v330_v41 = vld [vmem:[%s2283_s11 + $0x258] sm:$0xff] }
  0x9c   : > { %v1011_v57 = vadd.f32 %v2292_v8, %v658_v44  ;;  %v1012_v58 = vadd.f32 %v2297_v11, %v659_v45  ;;  %v1013_v62 = vadd.f32 %v2292_v8, %v660_v48  ;;  %v1014_v63 = vadd.f32 %v2297_v11, %v661_v49  ;;  %v331_v42 = vld [vmem:[%s2283_s11 + $0x260] sm:$0xff]  ;;  %v333_v48 = vld [vmem:[%s2283_s11 + $0x270] sm:$0xff]  ;;  %v334_v49 = vld [vmem:[%s2283_s11 + $0x278] sm:$0xff] }
  0x9d   : > { %v1015_v0 = vadd.f32 %v2292_v8, %v662_v50  ;;  %v1016_v1 = vadd.f32 %v2297_v11, %v663_v51  ;;  %1351 = vst [vmem:[%s2330_s18 + $0x180] sm:$0xff] %v1009_v55  ;;  %1352 = vst [vmem:[%s2330_s18 + $0x188] sm:$0xff] %v1010_v56  ;;  %v664_v2 = vmul.f32 %v2290_v7, %v311_v46 }
  0x9e   : > { %1353 = vst [vmem:[%s2330_s18 + $0x190] sm:$0xff] %v1011_v57  ;;  %1354 = vst [vmem:[%s2330_s18 + $0x198] sm:$0xff] %v1012_v58  ;;  %v665_v3 = vmul.f32 %v2295_v10, %v312_v47  ;;  %v666_v4 = vmul.f32 %v2290_v7, %v313_v52  ;;  %v667_v5 = vmul.f32 %v2295_v10, %v314_v53  ;;  %v332_v47 = vld [vmem:[%s2283_s11 + $0x268] sm:$0xff]  ;;  %v335_v58 = vld [vmem:[%s2283_s11 + $0x280] sm:$0xff] }
  0x9f   : > { %1355 = vst [vmem:[%s2330_s18 + $0x1a0] sm:$0xff] %v1013_v62  ;;  %1356 = vst [vmem:[%s2330_s18 + $0x1a8] sm:$0xff] %v1014_v63  ;;  %v668_v12 = vmul.f32 %v2290_v7, %v315_v54  ;;  %v669_v13 = vmul.f32 %v2295_v10, %v316_v59  ;;  %v670_v14 = vmul.f32 %v2290_v7, %v317_v60  ;;  %v336_v59 = vld [vmem:[%s2283_s11 + $0x288] sm:$0xff] }
  0xa0   : > { %1357 = vst [vmem:[%s2330_s18 + $0x1b0] sm:$0xff] %v1015_v0  ;;  %1358 = vst [vmem:[%s2330_s18 + $0x1b8] sm:$0xff] %v1016_v1  ;;  %v671_v15 = vmul.f32 %v2295_v10, %v318_v61  ;;  %v1017_v19 = vadd.f32 %v2292_v8, %v664_v2  ;;  %v1018_v20 = vadd.f32 %v2297_v11, %v665_v3  ;;  %v337_v0 = vld [vmem:[%s2283_s11 + $0x290] sm:$0xff]  ;;  %v338_v1 = vld [vmem:[%s2283_s11 + $0x298] sm:$0xff] }
  0xa1   : > { %v1019_v21 = vadd.f32 %v2292_v8, %v666_v4  ;;  %v1020_v22 = vadd.f32 %v2297_v11, %v667_v5  ;;  %v1021_v26 = vadd.f32 %v2292_v8, %v668_v12  ;;  %v1022_v27 = vadd.f32 %v2297_v11, %v669_v13  ;;  %v339_v2 = vld [vmem:[%s2283_s11 + $0x2a0] sm:$0xff]  ;;  %v341_v12 = vld [vmem:[%s2283_s11 + $0x2b0] sm:$0xff]  ;;  %v342_v13 = vld [vmem:[%s2283_s11 + $0x2b8] sm:$0xff] }
  0xa2   : > { %v1023_v28 = vadd.f32 %v2292_v8, %v670_v14  ;;  %v1024_v29 = vadd.f32 %v2297_v11, %v671_v15  ;;  %1359 = vst [vmem:[%s2330_s18 + $0x1c0] sm:$0xff] %v1017_v19  ;;  %1360 = vst [vmem:[%s2330_s18 + $0x1c8] sm:$0xff] %v1018_v20  ;;  %v672_v30 = vmul.f32 %v2290_v7, %v319_v6 }
  0xa3   : > { %1361 = vst [vmem:[%s2330_s18 + $0x1d0] sm:$0xff] %v1019_v21  ;;  %1362 = vst [vmem:[%s2330_s18 + $0x1d8] sm:$0xff] %v1020_v22  ;;  %v673_v31 = vmul.f32 %v2295_v10, %v320_v9  ;;  %v674_v32 = vmul.f32 %v2290_v7, %v321_v16  ;;  %v675_v33 = vmul.f32 %v2295_v10, %v322_v17  ;;  %v340_v9 = vld [vmem:[%s2283_s11 + $0x2a8] sm:$0xff]  ;;  %v343_v22 = vld [vmem:[%s2283_s11 + $0x2c0] sm:$0xff] }
  0xa4   : > { %1363 = vst [vmem:[%s2330_s18 + $0x1e0] sm:$0xff] %v1021_v26  ;;  %1364 = vst [vmem:[%s2330_s18 + $0x1e8] sm:$0xff] %v1022_v27  ;;  %v676_v36 = vmul.f32 %v2290_v7, %v323_v18  ;;  %v677_v37 = vmul.f32 %v2295_v10, %v324_v23  ;;  %v678_v38 = vmul.f32 %v2290_v7, %v325_v24  ;;  %v344_v23 = vld [vmem:[%s2283_s11 + $0x2c8] sm:$0xff] }
  0xa5   : > { %1365 = vst [vmem:[%s2330_s18 + $0x1f0] sm:$0xff] %v1023_v28  ;;  %1366 = vst [vmem:[%s2330_s18 + $0x1f8] sm:$0xff] %v1024_v29  ;;  %v679_v39 = vmul.f32 %v2295_v10, %v326_v25  ;;  %v1025_v43 = vadd.f32 %v2292_v8, %v672_v30  ;;  %v1026_v44 = vadd.f32 %v2297_v11, %v673_v31  ;;  %v345_v28 = vld [vmem:[%s2283_s11 + $0x2d0] sm:$0xff]  ;;  %v346_v29 = vld [vmem:[%s2283_s11 + $0x2d8] sm:$0xff] }
  0xa6   : > { %v1027_v45 = vadd.f32 %v2292_v8, %v674_v32  ;;  %v1028_v46 = vadd.f32 %v2297_v11, %v675_v33  ;;  %v1029_v50 = vadd.f32 %v2292_v8, %v676_v36  ;;  %v1030_v51 = vadd.f32 %v2297_v11, %v677_v37  ;;  %v347_v30 = vld [vmem:[%s2283_s11 + $0x2e0] sm:$0xff]  ;;  %v349_v36 = vld [vmem:[%s2283_s11 + $0x2f0] sm:$0xff]  ;;  %v350_v37 = vld [vmem:[%s2283_s11 + $0x2f8] sm:$0xff] }
  0xa7   : > { %v1031_v52 = vadd.f32 %v2292_v8, %v678_v38  ;;  %v1032_v53 = vadd.f32 %v2297_v11, %v679_v39  ;;  %1367 = vst [vmem:[%s2330_s18 + $0x200] sm:$0xff] %v1025_v43  ;;  %1368 = vst [vmem:[%s2330_s18 + $0x208] sm:$0xff] %v1026_v44  ;;  %v680_v54 = vmul.f32 %v2290_v7, %v327_v34 }
  0xa8   : > { %1369 = vst [vmem:[%s2330_s18 + $0x210] sm:$0xff] %v1027_v45  ;;  %1370 = vst [vmem:[%s2330_s18 + $0x218] sm:$0xff] %v1028_v46  ;;  %v681_v55 = vmul.f32 %v2295_v10, %v328_v35  ;;  %v682_v56 = vmul.f32 %v2290_v7, %v329_v40  ;;  %v683_v57 = vmul.f32 %v2295_v10, %v330_v41  ;;  %v348_v35 = vld [vmem:[%s2283_s11 + $0x2e8] sm:$0xff]  ;;  %v351_v46 = vld [vmem:[%s2283_s11 + $0x300] sm:$0xff] }
  0xa9   : > { %1371 = vst [vmem:[%s2330_s18 + $0x220] sm:$0xff] %v1029_v50  ;;  %1372 = vst [vmem:[%s2330_s18 + $0x228] sm:$0xff] %v1030_v51  ;;  %v684_v60 = vmul.f32 %v2290_v7, %v331_v42  ;;  %v685_v61 = vmul.f32 %v2295_v10, %v332_v47  ;;  %v686_v62 = vmul.f32 %v2290_v7, %v333_v48  ;;  %v352_v47 = vld [vmem:[%s2283_s11 + $0x308] sm:$0xff] }
  0xaa   : > { %1373 = vst [vmem:[%s2330_s18 + $0x230] sm:$0xff] %v1031_v52  ;;  %1374 = vst [vmem:[%s2330_s18 + $0x238] sm:$0xff] %v1032_v53  ;;  %v687_v63 = vmul.f32 %v2295_v10, %v334_v49  ;;  %v1033_v3 = vadd.f32 %v2292_v8, %v680_v54  ;;  %v1034_v4 = vadd.f32 %v2297_v11, %v681_v55  ;;  %v353_v52 = vld [vmem:[%s2283_s11 + $0x310] sm:$0xff]  ;;  %v354_v53 = vld [vmem:[%s2283_s11 + $0x318] sm:$0xff] }
  0xab   : > { %v1035_v5 = vadd.f32 %v2292_v8, %v682_v56  ;;  %v1036_v6 = vadd.f32 %v2297_v11, %v683_v57  ;;  %v1037_v14 = vadd.f32 %v2292_v8, %v684_v60  ;;  %v1038_v15 = vadd.f32 %v2297_v11, %v685_v61  ;;  %v355_v54 = vld [vmem:[%s2283_s11 + $0x320] sm:$0xff]  ;;  %v357_v60 = vld [vmem:[%s2283_s11 + $0x330] sm:$0xff]  ;;  %v358_v61 = vld [vmem:[%s2283_s11 + $0x338] sm:$0xff] }
  0xac   : > { %v1039_v16 = vadd.f32 %v2292_v8, %v686_v62  ;;  %v1040_v17 = vadd.f32 %v2297_v11, %v687_v63  ;;  %1375 = vst [vmem:[%s2330_s18 + $0x240] sm:$0xff] %v1033_v3  ;;  %1376 = vst [vmem:[%s2330_s18 + $0x248] sm:$0xff] %v1034_v4  ;;  %v688_v18 = vmul.f32 %v2290_v7, %v335_v58 }
  0xad   : > { %1377 = vst [vmem:[%s2330_s18 + $0x250] sm:$0xff] %v1035_v5  ;;  %1378 = vst [vmem:[%s2330_s18 + $0x258] sm:$0xff] %v1036_v6  ;;  %v689_v19 = vmul.f32 %v2295_v10, %v336_v59  ;;  %v690_v20 = vmul.f32 %v2290_v7, %v337_v0  ;;  %v691_v21 = vmul.f32 %v2295_v10, %v338_v1  ;;  %v356_v59 = vld [vmem:[%s2283_s11 + $0x328] sm:$0xff]  ;;  %v359_v6 = vld [vmem:[%s2283_s11 + $0x340] sm:$0xff] }
  0xae   : > { %1379 = vst [vmem:[%s2330_s18 + $0x260] sm:$0xff] %v1037_v14  ;;  %1380 = vst [vmem:[%s2330_s18 + $0x268] sm:$0xff] %v1038_v15  ;;  %v692_v24 = vmul.f32 %v2290_v7, %v339_v2  ;;  %v693_v25 = vmul.f32 %v2295_v10, %v340_v9  ;;  %v694_v26 = vmul.f32 %v2290_v7, %v341_v12  ;;  %v360_v9 = vld [vmem:[%s2283_s11 + $0x348] sm:$0xff] }
  0xaf   : > { %1381 = vst [vmem:[%s2330_s18 + $0x270] sm:$0xff] %v1039_v16  ;;  %1382 = vst [vmem:[%s2330_s18 + $0x278] sm:$0xff] %v1040_v17  ;;  %v695_v27 = vmul.f32 %v2295_v10, %v342_v13  ;;  %v1041_v31 = vadd.f32 %v2292_v8, %v688_v18  ;;  %v1042_v32 = vadd.f32 %v2297_v11, %v689_v19  ;;  %v361_v16 = vld [vmem:[%s2283_s11 + $0x350] sm:$0xff]  ;;  %v362_v17 = vld [vmem:[%s2283_s11 + $0x358] sm:$0xff] }
  0xb0   : > { %v1043_v33 = vadd.f32 %v2292_v8, %v690_v20  ;;  %v1044_v34 = vadd.f32 %v2297_v11, %v691_v21  ;;  %v1045_v38 = vadd.f32 %v2292_v8, %v692_v24  ;;  %v1046_v39 = vadd.f32 %v2297_v11, %v693_v25  ;;  %v363_v18 = vld [vmem:[%s2283_s11 + $0x360] sm:$0xff]  ;;  %v365_v24 = vld [vmem:[%s2283_s11 + $0x370] sm:$0xff]  ;;  %v366_v25 = vld [vmem:[%s2283_s11 + $0x378] sm:$0xff] }
  0xb1   : > { %v1047_v40 = vadd.f32 %v2292_v8, %v694_v26  ;;  %v1048_v41 = vadd.f32 %v2297_v11, %v695_v27  ;;  %1383 = vst [vmem:[%s2330_s18 + $0x280] sm:$0xff] %v1041_v31  ;;  %1384 = vst [vmem:[%s2330_s18 + $0x288] sm:$0xff] %v1042_v32  ;;  %v696_v42 = vmul.f32 %v2290_v7, %v343_v22 }
  0xb2   : > { %1385 = vst [vmem:[%s2330_s18 + $0x290] sm:$0xff] %v1043_v33  ;;  %1386 = vst [vmem:[%s2330_s18 + $0x298] sm:$0xff] %v1044_v34  ;;  %v697_v43 = vmul.f32 %v2295_v10, %v344_v23  ;;  %v698_v44 = vmul.f32 %v2290_v7, %v345_v28  ;;  %v699_v45 = vmul.f32 %v2295_v10, %v346_v29  ;;  %v364_v23 = vld [vmem:[%s2283_s11 + $0x368] sm:$0xff]  ;;  %v367_v34 = vld [vmem:[%s2283_s11 + $0x380] sm:$0xff] }
  0xb3   : > { %1387 = vst [vmem:[%s2330_s18 + $0x2a0] sm:$0xff] %v1045_v38  ;;  %1388 = vst [vmem:[%s2330_s18 + $0x2a8] sm:$0xff] %v1046_v39  ;;  %v700_v48 = vmul.f32 %v2290_v7, %v347_v30  ;;  %v701_v49 = vmul.f32 %v2295_v10, %v348_v35  ;;  %v702_v50 = vmul.f32 %v2290_v7, %v349_v36  ;;  %v368_v35 = vld [vmem:[%s2283_s11 + $0x388] sm:$0xff] }
  0xb4   : > { %1389 = vst [vmem:[%s2330_s18 + $0x2b0] sm:$0xff] %v1047_v40  ;;  %1390 = vst [vmem:[%s2330_s18 + $0x2b8] sm:$0xff] %v1048_v41  ;;  %v703_v51 = vmul.f32 %v2295_v10, %v350_v37  ;;  %v1049_v55 = vadd.f32 %v2292_v8, %v696_v42  ;;  %v1050_v56 = vadd.f32 %v2297_v11, %v697_v43  ;;  %v369_v40 = vld [vmem:[%s2283_s11 + $0x390] sm:$0xff]  ;;  %v370_v41 = vld [vmem:[%s2283_s11 + $0x398] sm:$0xff] }
  0xb5   : > { %v1051_v57 = vadd.f32 %v2292_v8, %v698_v44  ;;  %v1052_v58 = vadd.f32 %v2297_v11, %v699_v45  ;;  %v1053_v62 = vadd.f32 %v2292_v8, %v700_v48  ;;  %v1054_v63 = vadd.f32 %v2297_v11, %v701_v49  ;;  %v371_v42 = vld [vmem:[%s2283_s11 + $0x3a0] sm:$0xff]  ;;  %v373_v48 = vld [vmem:[%s2283_s11 + $0x3b0] sm:$0xff]  ;;  %v374_v49 = vld [vmem:[%s2283_s11 + $0x3b8] sm:$0xff] }
  0xb6   : > { %v1055_v0 = vadd.f32 %v2292_v8, %v702_v50  ;;  %v1056_v1 = vadd.f32 %v2297_v11, %v703_v51  ;;  %1391 = vst [vmem:[%s2330_s18 + $0x2c0] sm:$0xff] %v1049_v55  ;;  %1392 = vst [vmem:[%s2330_s18 + $0x2c8] sm:$0xff] %v1050_v56  ;;  %v704_v2 = vmul.f32 %v2290_v7, %v351_v46 }
  0xb7   : > { %1393 = vst [vmem:[%s2330_s18 + $0x2d0] sm:$0xff] %v1051_v57  ;;  %1394 = vst [vmem:[%s2330_s18 + $0x2d8] sm:$0xff] %v1052_v58  ;;  %v705_v3 = vmul.f32 %v2295_v10, %v352_v47  ;;  %v706_v4 = vmul.f32 %v2290_v7, %v353_v52  ;;  %v707_v5 = vmul.f32 %v2295_v10, %v354_v53  ;;  %v372_v47 = vld [vmem:[%s2283_s11 + $0x3a8] sm:$0xff]  ;;  %v375_v58 = vld [vmem:[%s2283_s11 + $0x3c0] sm:$0xff] }
  0xb8   : > { %1395 = vst [vmem:[%s2330_s18 + $0x2e0] sm:$0xff] %v1053_v62  ;;  %1396 = vst [vmem:[%s2330_s18 + $0x2e8] sm:$0xff] %v1054_v63  ;;  %v708_v12 = vmul.f32 %v2290_v7, %v355_v54  ;;  %v709_v13 = vmul.f32 %v2295_v10, %v356_v59  ;;  %v710_v14 = vmul.f32 %v2290_v7, %v357_v60  ;;  %v376_v59 = vld [vmem:[%s2283_s11 + $0x3c8] sm:$0xff] }
  0xb9   : > { %1397 = vst [vmem:[%s2330_s18 + $0x2f0] sm:$0xff] %v1055_v0  ;;  %1398 = vst [vmem:[%s2330_s18 + $0x2f8] sm:$0xff] %v1056_v1  ;;  %v711_v15 = vmul.f32 %v2295_v10, %v358_v61  ;;  %v1057_v19 = vadd.f32 %v2292_v8, %v704_v2  ;;  %v1058_v20 = vadd.f32 %v2297_v11, %v705_v3  ;;  %v377_v0 = vld [vmem:[%s2283_s11 + $0x3d0] sm:$0xff]  ;;  %v378_v1 = vld [vmem:[%s2283_s11 + $0x3d8] sm:$0xff] }
  0xba   : > { %v1059_v21 = vadd.f32 %v2292_v8, %v706_v4  ;;  %v1060_v22 = vadd.f32 %v2297_v11, %v707_v5  ;;  %v1061_v26 = vadd.f32 %v2292_v8, %v708_v12  ;;  %v1062_v27 = vadd.f32 %v2297_v11, %v709_v13  ;;  %v379_v2 = vld [vmem:[%s2283_s11 + $0x3e0] sm:$0xff]  ;;  %v381_v12 = vld [vmem:[%s2283_s11 + $0x3f0] sm:$0xff]  ;;  %v382_v13 = vld [vmem:[%s2283_s11 + $0x3f8] sm:$0xff] }
  0xbb   : > { %v1063_v28 = vadd.f32 %v2292_v8, %v710_v14  ;;  %v1064_v29 = vadd.f32 %v2297_v11, %v711_v15  ;;  %1399 = vst [vmem:[%s2330_s18 + $0x300] sm:$0xff] %v1057_v19  ;;  %1400 = vst [vmem:[%s2330_s18 + $0x308] sm:$0xff] %v1058_v20  ;;  %v712_v30 = vmul.f32 %v2290_v7, %v359_v6 }
  0xbc   : > { %1401 = vst [vmem:[%s2330_s18 + $0x310] sm:$0xff] %v1059_v21  ;;  %1402 = vst [vmem:[%s2330_s18 + $0x318] sm:$0xff] %v1060_v22  ;;  %v713_v31 = vmul.f32 %v2295_v10, %v360_v9  ;;  %v714_v32 = vmul.f32 %v2290_v7, %v361_v16  ;;  %v715_v33 = vmul.f32 %v2295_v10, %v362_v17  ;;  %v380_v9 = vld [vmem:[%s2283_s11 + $0x3e8] sm:$0xff]  ;;  %v383_v22 = vld [vmem:[%s2283_s11 + $0x400] sm:$0xff] }
  0xbd   : > { %1403 = vst [vmem:[%s2330_s18 + $0x320] sm:$0xff] %v1061_v26  ;;  %1404 = vst [vmem:[%s2330_s18 + $0x328] sm:$0xff] %v1062_v27  ;;  %v716_v36 = vmul.f32 %v2290_v7, %v363_v18  ;;  %v717_v37 = vmul.f32 %v2295_v10, %v364_v23  ;;  %v718_v38 = vmul.f32 %v2290_v7, %v365_v24  ;;  %v384_v23 = vld [vmem:[%s2283_s11 + $0x408] sm:$0xff] }
  0xbe   : > { %1405 = vst [vmem:[%s2330_s18 + $0x330] sm:$0xff] %v1063_v28  ;;  %1406 = vst [vmem:[%s2330_s18 + $0x338] sm:$0xff] %v1064_v29  ;;  %v719_v39 = vmul.f32 %v2295_v10, %v366_v25  ;;  %v1065_v43 = vadd.f32 %v2292_v8, %v712_v30  ;;  %v1066_v44 = vadd.f32 %v2297_v11, %v713_v31  ;;  %v385_v28 = vld [vmem:[%s2283_s11 + $0x410] sm:$0xff]  ;;  %v386_v29 = vld [vmem:[%s2283_s11 + $0x418] sm:$0xff] }
  0xbf   : > { %v1067_v45 = vadd.f32 %v2292_v8, %v714_v32  ;;  %v1068_v46 = vadd.f32 %v2297_v11, %v715_v33  ;;  %v1069_v50 = vadd.f32 %v2292_v8, %v716_v36  ;;  %v1070_v51 = vadd.f32 %v2297_v11, %v717_v37  ;;  %v387_v30 = vld [vmem:[%s2283_s11 + $0x420] sm:$0xff]  ;;  %v389_v36 = vld [vmem:[%s2283_s11 + $0x430] sm:$0xff]  ;;  %v390_v37 = vld [vmem:[%s2283_s11 + $0x438] sm:$0xff] }
  0xc0   : > { %v1071_v52 = vadd.f32 %v2292_v8, %v718_v38  ;;  %v1072_v53 = vadd.f32 %v2297_v11, %v719_v39  ;;  %1407 = vst [vmem:[%s2330_s18 + $0x340] sm:$0xff] %v1065_v43  ;;  %1408 = vst [vmem:[%s2330_s18 + $0x348] sm:$0xff] %v1066_v44  ;;  %v720_v54 = vmul.f32 %v2290_v7, %v367_v34 }
  0xc1   : > { %1409 = vst [vmem:[%s2330_s18 + $0x350] sm:$0xff] %v1067_v45  ;;  %1410 = vst [vmem:[%s2330_s18 + $0x358] sm:$0xff] %v1068_v46  ;;  %v721_v55 = vmul.f32 %v2295_v10, %v368_v35  ;;  %v722_v56 = vmul.f32 %v2290_v7, %v369_v40  ;;  %v723_v57 = vmul.f32 %v2295_v10, %v370_v41  ;;  %v388_v35 = vld [vmem:[%s2283_s11 + $0x428] sm:$0xff]  ;;  %v391_v46 = vld [vmem:[%s2283_s11 + $0x440] sm:$0xff] }
  0xc2   : > { %1411 = vst [vmem:[%s2330_s18 + $0x360] sm:$0xff] %v1069_v50  ;;  %1412 = vst [vmem:[%s2330_s18 + $0x368] sm:$0xff] %v1070_v51  ;;  %v724_v60 = vmul.f32 %v2290_v7, %v371_v42  ;;  %v725_v61 = vmul.f32 %v2295_v10, %v372_v47  ;;  %v726_v62 = vmul.f32 %v2290_v7, %v373_v48  ;;  %v392_v47 = vld [vmem:[%s2283_s11 + $0x448] sm:$0xff] }
  0xc3   : > { %1413 = vst [vmem:[%s2330_s18 + $0x370] sm:$0xff] %v1071_v52  ;;  %1414 = vst [vmem:[%s2330_s18 + $0x378] sm:$0xff] %v1072_v53  ;;  %v727_v63 = vmul.f32 %v2295_v10, %v374_v49  ;;  %v1073_v3 = vadd.f32 %v2292_v8, %v720_v54  ;;  %v1074_v4 = vadd.f32 %v2297_v11, %v721_v55  ;;  %v393_v52 = vld [vmem:[%s2283_s11 + $0x450] sm:$0xff]  ;;  %v394_v53 = vld [vmem:[%s2283_s11 + $0x458] sm:$0xff] }
  0xc4   : > { %v1075_v5 = vadd.f32 %v2292_v8, %v722_v56  ;;  %v1076_v6 = vadd.f32 %v2297_v11, %v723_v57  ;;  %v1077_v14 = vadd.f32 %v2292_v8, %v724_v60  ;;  %v1078_v15 = vadd.f32 %v2297_v11, %v725_v61  ;;  %v395_v54 = vld [vmem:[%s2283_s11 + $0x460] sm:$0xff]  ;;  %v397_v60 = vld [vmem:[%s2283_s11 + $0x470] sm:$0xff]  ;;  %v398_v61 = vld [vmem:[%s2283_s11 + $0x478] sm:$0xff] }
  0xc5   : > { %v1079_v16 = vadd.f32 %v2292_v8, %v726_v62  ;;  %v1080_v17 = vadd.f32 %v2297_v11, %v727_v63  ;;  %1415 = vst [vmem:[%s2330_s18 + $0x380] sm:$0xff] %v1073_v3  ;;  %1416 = vst [vmem:[%s2330_s18 + $0x388] sm:$0xff] %v1074_v4  ;;  %v728_v18 = vmul.f32 %v2290_v7, %v375_v58 }
  0xc6   : > { %1417 = vst [vmem:[%s2330_s18 + $0x390] sm:$0xff] %v1075_v5  ;;  %1418 = vst [vmem:[%s2330_s18 + $0x398] sm:$0xff] %v1076_v6  ;;  %v729_v19 = vmul.f32 %v2295_v10, %v376_v59  ;;  %v730_v20 = vmul.f32 %v2290_v7, %v377_v0  ;;  %v731_v21 = vmul.f32 %v2295_v10, %v378_v1  ;;  %v396_v59 = vld [vmem:[%s2283_s11 + $0x468] sm:$0xff]  ;;  %v399_v6 = vld [vmem:[%s2283_s11 + $0x480] sm:$0xff] }
  0xc7   : > { %1419 = vst [vmem:[%s2330_s18 + $0x3a0] sm:$0xff] %v1077_v14  ;;  %1420 = vst [vmem:[%s2330_s18 + $0x3a8] sm:$0xff] %v1078_v15  ;;  %v732_v24 = vmul.f32 %v2290_v7, %v379_v2  ;;  %v733_v25 = vmul.f32 %v2295_v10, %v380_v9  ;;  %v734_v26 = vmul.f32 %v2290_v7, %v381_v12  ;;  %v400_v9 = vld [vmem:[%s2283_s11 + $0x488] sm:$0xff] }
  0xc8   : > { %1421 = vst [vmem:[%s2330_s18 + $0x3b0] sm:$0xff] %v1079_v16  ;;  %1422 = vst [vmem:[%s2330_s18 + $0x3b8] sm:$0xff] %v1080_v17  ;;  %v735_v27 = vmul.f32 %v2295_v10, %v382_v13  ;;  %v1081_v31 = vadd.f32 %v2292_v8, %v728_v18  ;;  %v1082_v32 = vadd.f32 %v2297_v11, %v729_v19  ;;  %v401_v16 = vld [vmem:[%s2283_s11 + $0x490] sm:$0xff]  ;;  %v402_v17 = vld [vmem:[%s2283_s11 + $0x498] sm:$0xff] }
  0xc9   : > { %v1083_v33 = vadd.f32 %v2292_v8, %v730_v20  ;;  %v1084_v34 = vadd.f32 %v2297_v11, %v731_v21  ;;  %v1085_v38 = vadd.f32 %v2292_v8, %v732_v24  ;;  %v1086_v39 = vadd.f32 %v2297_v11, %v733_v25  ;;  %v403_v18 = vld [vmem:[%s2283_s11 + $0x4a0] sm:$0xff]  ;;  %v405_v24 = vld [vmem:[%s2283_s11 + $0x4b0] sm:$0xff]  ;;  %v406_v25 = vld [vmem:[%s2283_s11 + $0x4b8] sm:$0xff] }
  0xca   : > { %v1087_v40 = vadd.f32 %v2292_v8, %v734_v26  ;;  %v1088_v41 = vadd.f32 %v2297_v11, %v735_v27  ;;  %1423 = vst [vmem:[%s2330_s18 + $0x3c0] sm:$0xff] %v1081_v31  ;;  %1424 = vst [vmem:[%s2330_s18 + $0x3c8] sm:$0xff] %v1082_v32  ;;  %v736_v42 = vmul.f32 %v2290_v7, %v383_v22 }
  0xcb   : > { %1425 = vst [vmem:[%s2330_s18 + $0x3d0] sm:$0xff] %v1083_v33  ;;  %1426 = vst [vmem:[%s2330_s18 + $0x3d8] sm:$0xff] %v1084_v34  ;;  %v737_v43 = vmul.f32 %v2295_v10, %v384_v23  ;;  %v738_v44 = vmul.f32 %v2290_v7, %v385_v28  ;;  %v739_v45 = vmul.f32 %v2295_v10, %v386_v29  ;;  %v404_v23 = vld [vmem:[%s2283_s11 + $0x4a8] sm:$0xff]  ;;  %v407_v34 = vld [vmem:[%s2283_s11 + $0x4c0] sm:$0xff] }
  0xcc   : > { %1427 = vst [vmem:[%s2330_s18 + $0x3e0] sm:$0xff] %v1085_v38  ;;  %1428 = vst [vmem:[%s2330_s18 + $0x3e8] sm:$0xff] %v1086_v39  ;;  %v740_v48 = vmul.f32 %v2290_v7, %v387_v30  ;;  %v741_v49 = vmul.f32 %v2295_v10, %v388_v35  ;;  %v742_v50 = vmul.f32 %v2290_v7, %v389_v36  ;;  %v408_v35 = vld [vmem:[%s2283_s11 + $0x4c8] sm:$0xff] }
  0xcd   : > { %1429 = vst [vmem:[%s2330_s18 + $0x3f0] sm:$0xff] %v1087_v40  ;;  %1430 = vst [vmem:[%s2330_s18 + $0x3f8] sm:$0xff] %v1088_v41  ;;  %v743_v51 = vmul.f32 %v2295_v10, %v390_v37  ;;  %v1089_v55 = vadd.f32 %v2292_v8, %v736_v42  ;;  %v1090_v56 = vadd.f32 %v2297_v11, %v737_v43  ;;  %v409_v40 = vld [vmem:[%s2283_s11 + $0x4d0] sm:$0xff]  ;;  %v410_v41 = vld [vmem:[%s2283_s11 + $0x4d8] sm:$0xff] }
  0xce   : > { %v1091_v57 = vadd.f32 %v2292_v8, %v738_v44  ;;  %v1092_v58 = vadd.f32 %v2297_v11, %v739_v45  ;;  %v1093_v62 = vadd.f32 %v2292_v8, %v740_v48  ;;  %v1094_v63 = vadd.f32 %v2297_v11, %v741_v49  ;;  %v411_v42 = vld [vmem:[%s2283_s11 + $0x4e0] sm:$0xff]  ;;  %v413_v48 = vld [vmem:[%s2283_s11 + $0x4f0] sm:$0xff]  ;;  %v414_v49 = vld [vmem:[%s2283_s11 + $0x4f8] sm:$0xff] }
  0xcf   : > { %v1095_v0 = vadd.f32 %v2292_v8, %v742_v50  ;;  %v1096_v1 = vadd.f32 %v2297_v11, %v743_v51  ;;  %1431 = vst [vmem:[%s2330_s18 + $0x400] sm:$0xff] %v1089_v55  ;;  %1432 = vst [vmem:[%s2330_s18 + $0x408] sm:$0xff] %v1090_v56  ;;  %v744_v2 = vmul.f32 %v2290_v7, %v391_v46 }
  0xd0   : > { %1433 = vst [vmem:[%s2330_s18 + $0x410] sm:$0xff] %v1091_v57  ;;  %1434 = vst [vmem:[%s2330_s18 + $0x418] sm:$0xff] %v1092_v58  ;;  %v745_v3 = vmul.f32 %v2295_v10, %v392_v47  ;;  %v746_v4 = vmul.f32 %v2290_v7, %v393_v52  ;;  %v747_v5 = vmul.f32 %v2295_v10, %v394_v53  ;;  %v412_v47 = vld [vmem:[%s2283_s11 + $0x4e8] sm:$0xff]  ;;  %v415_v58 = vld [vmem:[%s2283_s11 + $0x500] sm:$0xff] }
  0xd1   : > { %1435 = vst [vmem:[%s2330_s18 + $0x420] sm:$0xff] %v1093_v62  ;;  %1436 = vst [vmem:[%s2330_s18 + $0x428] sm:$0xff] %v1094_v63  ;;  %v748_v12 = vmul.f32 %v2290_v7, %v395_v54  ;;  %v749_v13 = vmul.f32 %v2295_v10, %v396_v59  ;;  %v750_v14 = vmul.f32 %v2290_v7, %v397_v60  ;;  %v416_v59 = vld [vmem:[%s2283_s11 + $0x508] sm:$0xff] }
  0xd2   : > { %1437 = vst [vmem:[%s2330_s18 + $0x430] sm:$0xff] %v1095_v0  ;;  %1438 = vst [vmem:[%s2330_s18 + $0x438] sm:$0xff] %v1096_v1  ;;  %v751_v15 = vmul.f32 %v2295_v10, %v398_v61  ;;  %v1097_v19 = vadd.f32 %v2292_v8, %v744_v2  ;;  %v1098_v20 = vadd.f32 %v2297_v11, %v745_v3  ;;  %v417_v0 = vld [vmem:[%s2283_s11 + $0x510] sm:$0xff]  ;;  %v418_v1 = vld [vmem:[%s2283_s11 + $0x518] sm:$0xff] }
  0xd3   : > { %v1099_v21 = vadd.f32 %v2292_v8, %v746_v4  ;;  %v1100_v22 = vadd.f32 %v2297_v11, %v747_v5  ;;  %v1101_v26 = vadd.f32 %v2292_v8, %v748_v12  ;;  %v1102_v27 = vadd.f32 %v2297_v11, %v749_v13  ;;  %v419_v2 = vld [vmem:[%s2283_s11 + $0x520] sm:$0xff]  ;;  %v421_v12 = vld [vmem:[%s2283_s11 + $0x530] sm:$0xff]  ;;  %v422_v13 = vld [vmem:[%s2283_s11 + $0x538] sm:$0xff] }
  0xd4   : > { %v1103_v28 = vadd.f32 %v2292_v8, %v750_v14  ;;  %v1104_v29 = vadd.f32 %v2297_v11, %v751_v15  ;;  %1439 = vst [vmem:[%s2330_s18 + $0x440] sm:$0xff] %v1097_v19  ;;  %1440 = vst [vmem:[%s2330_s18 + $0x448] sm:$0xff] %v1098_v20  ;;  %v752_v30 = vmul.f32 %v2290_v7, %v399_v6 }
  0xd5   : > { %1441 = vst [vmem:[%s2330_s18 + $0x450] sm:$0xff] %v1099_v21  ;;  %1442 = vst [vmem:[%s2330_s18 + $0x458] sm:$0xff] %v1100_v22  ;;  %v753_v31 = vmul.f32 %v2295_v10, %v400_v9  ;;  %v754_v32 = vmul.f32 %v2290_v7, %v401_v16  ;;  %v755_v33 = vmul.f32 %v2295_v10, %v402_v17  ;;  %v420_v9 = vld [vmem:[%s2283_s11 + $0x528] sm:$0xff]  ;;  %v423_v22 = vld [vmem:[%s2283_s11 + $0x540] sm:$0xff] }
  0xd6   : > { %1443 = vst [vmem:[%s2330_s18 + $0x460] sm:$0xff] %v1101_v26  ;;  %1444 = vst [vmem:[%s2330_s18 + $0x468] sm:$0xff] %v1102_v27  ;;  %v756_v36 = vmul.f32 %v2290_v7, %v403_v18  ;;  %v757_v37 = vmul.f32 %v2295_v10, %v404_v23  ;;  %v758_v38 = vmul.f32 %v2290_v7, %v405_v24  ;;  %v424_v23 = vld [vmem:[%s2283_s11 + $0x548] sm:$0xff] }
  0xd7   : > { %1445 = vst [vmem:[%s2330_s18 + $0x470] sm:$0xff] %v1103_v28  ;;  %1446 = vst [vmem:[%s2330_s18 + $0x478] sm:$0xff] %v1104_v29  ;;  %v759_v39 = vmul.f32 %v2295_v10, %v406_v25  ;;  %v1105_v43 = vadd.f32 %v2292_v8, %v752_v30  ;;  %v1106_v44 = vadd.f32 %v2297_v11, %v753_v31  ;;  %v425_v28 = vld [vmem:[%s2283_s11 + $0x550] sm:$0xff]  ;;  %v426_v29 = vld [vmem:[%s2283_s11 + $0x558] sm:$0xff] }
  0xd8   : > { %v1107_v45 = vadd.f32 %v2292_v8, %v754_v32  ;;  %v1108_v46 = vadd.f32 %v2297_v11, %v755_v33  ;;  %v1109_v50 = vadd.f32 %v2292_v8, %v756_v36  ;;  %v1110_v51 = vadd.f32 %v2297_v11, %v757_v37  ;;  %v427_v30 = vld [vmem:[%s2283_s11 + $0x560] sm:$0xff]  ;;  %v429_v36 = vld [vmem:[%s2283_s11 + $0x570] sm:$0xff]  ;;  %v430_v37 = vld [vmem:[%s2283_s11 + $0x578] sm:$0xff] }
  0xd9   : > { %v1111_v52 = vadd.f32 %v2292_v8, %v758_v38  ;;  %v1112_v53 = vadd.f32 %v2297_v11, %v759_v39  ;;  %1447 = vst [vmem:[%s2330_s18 + $0x480] sm:$0xff] %v1105_v43  ;;  %1448 = vst [vmem:[%s2330_s18 + $0x488] sm:$0xff] %v1106_v44  ;;  %v760_v54 = vmul.f32 %v2290_v7, %v407_v34 }
  0xda   : > { %1449 = vst [vmem:[%s2330_s18 + $0x490] sm:$0xff] %v1107_v45  ;;  %1450 = vst [vmem:[%s2330_s18 + $0x498] sm:$0xff] %v1108_v46  ;;  %v761_v55 = vmul.f32 %v2295_v10, %v408_v35  ;;  %v762_v56 = vmul.f32 %v2290_v7, %v409_v40  ;;  %v763_v57 = vmul.f32 %v2295_v10, %v410_v41  ;;  %v428_v35 = vld [vmem:[%s2283_s11 + $0x568] sm:$0xff]  ;;  %v431_v46 = vld [vmem:[%s2283_s11 + $0x580] sm:$0xff] }
  0xdb   : > { %1451 = vst [vmem:[%s2330_s18 + $0x4a0] sm:$0xff] %v1109_v50  ;;  %1452 = vst [vmem:[%s2330_s18 + $0x4a8] sm:$0xff] %v1110_v51  ;;  %v764_v60 = vmul.f32 %v2290_v7, %v411_v42  ;;  %v765_v61 = vmul.f32 %v2295_v10, %v412_v47  ;;  %v766_v62 = vmul.f32 %v2290_v7, %v413_v48  ;;  %v432_v47 = vld [vmem:[%s2283_s11 + $0x588] sm:$0xff] }
  0xdc   : > { %1453 = vst [vmem:[%s2330_s18 + $0x4b0] sm:$0xff] %v1111_v52  ;;  %1454 = vst [vmem:[%s2330_s18 + $0x4b8] sm:$0xff] %v1112_v53  ;;  %v767_v63 = vmul.f32 %v2295_v10, %v414_v49  ;;  %v1113_v3 = vadd.f32 %v2292_v8, %v760_v54  ;;  %v1114_v4 = vadd.f32 %v2297_v11, %v761_v55  ;;  %v433_v52 = vld [vmem:[%s2283_s11 + $0x590] sm:$0xff]  ;;  %v434_v53 = vld [vmem:[%s2283_s11 + $0x598] sm:$0xff] }
  0xdd   : > { %v1115_v5 = vadd.f32 %v2292_v8, %v762_v56  ;;  %v1116_v6 = vadd.f32 %v2297_v11, %v763_v57  ;;  %v1117_v14 = vadd.f32 %v2292_v8, %v764_v60  ;;  %v1118_v15 = vadd.f32 %v2297_v11, %v765_v61  ;;  %v435_v54 = vld [vmem:[%s2283_s11 + $0x5a0] sm:$0xff]  ;;  %v437_v60 = vld [vmem:[%s2283_s11 + $0x5b0] sm:$0xff]  ;;  %v438_v61 = vld [vmem:[%s2283_s11 + $0x5b8] sm:$0xff] }
  0xde   : > { %v1119_v16 = vadd.f32 %v2292_v8, %v766_v62  ;;  %v1120_v17 = vadd.f32 %v2297_v11, %v767_v63  ;;  %1455 = vst [vmem:[%s2330_s18 + $0x4c0] sm:$0xff] %v1113_v3  ;;  %1456 = vst [vmem:[%s2330_s18 + $0x4c8] sm:$0xff] %v1114_v4  ;;  %v768_v18 = vmul.f32 %v2290_v7, %v415_v58 }
  0xdf   : > { %1457 = vst [vmem:[%s2330_s18 + $0x4d0] sm:$0xff] %v1115_v5  ;;  %1458 = vst [vmem:[%s2330_s18 + $0x4d8] sm:$0xff] %v1116_v6  ;;  %v769_v19 = vmul.f32 %v2295_v10, %v416_v59  ;;  %v770_v20 = vmul.f32 %v2290_v7, %v417_v0  ;;  %v771_v21 = vmul.f32 %v2295_v10, %v418_v1  ;;  %v436_v59 = vld [vmem:[%s2283_s11 + $0x5a8] sm:$0xff]  ;;  %v439_v6 = vld [vmem:[%s2283_s11 + $0x5c0] sm:$0xff] }
  0xe0   : > { %1459 = vst [vmem:[%s2330_s18 + $0x4e0] sm:$0xff] %v1117_v14  ;;  %1460 = vst [vmem:[%s2330_s18 + $0x4e8] sm:$0xff] %v1118_v15  ;;  %v772_v24 = vmul.f32 %v2290_v7, %v419_v2  ;;  %v773_v25 = vmul.f32 %v2295_v10, %v420_v9  ;;  %v774_v26 = vmul.f32 %v2290_v7, %v421_v12  ;;  %v440_v9 = vld [vmem:[%s2283_s11 + $0x5c8] sm:$0xff] }
  0xe1   : > { %1461 = vst [vmem:[%s2330_s18 + $0x4f0] sm:$0xff] %v1119_v16  ;;  %1462 = vst [vmem:[%s2330_s18 + $0x4f8] sm:$0xff] %v1120_v17  ;;  %v775_v27 = vmul.f32 %v2295_v10, %v422_v13  ;;  %v1121_v31 = vadd.f32 %v2292_v8, %v768_v18  ;;  %v1122_v32 = vadd.f32 %v2297_v11, %v769_v19  ;;  %v441_v16 = vld [vmem:[%s2283_s11 + $0x5d0] sm:$0xff]  ;;  %v442_v17 = vld [vmem:[%s2283_s11 + $0x5d8] sm:$0xff] }
  0xe2   : > { %v1123_v33 = vadd.f32 %v2292_v8, %v770_v20  ;;  %v1124_v34 = vadd.f32 %v2297_v11, %v771_v21  ;;  %v1125_v38 = vadd.f32 %v2292_v8, %v772_v24  ;;  %v1126_v39 = vadd.f32 %v2297_v11, %v773_v25  ;;  %v443_v18 = vld [vmem:[%s2283_s11 + $0x5e0] sm:$0xff]  ;;  %v445_v24 = vld [vmem:[%s2283_s11 + $0x5f0] sm:$0xff]  ;;  %v446_v25 = vld [vmem:[%s2283_s11 + $0x5f8] sm:$0xff] }
  0xe3   : > { %v1127_v40 = vadd.f32 %v2292_v8, %v774_v26  ;;  %v1128_v41 = vadd.f32 %v2297_v11, %v775_v27  ;;  %1463 = vst [vmem:[%s2330_s18 + $0x500] sm:$0xff] %v1121_v31  ;;  %1464 = vst [vmem:[%s2330_s18 + $0x508] sm:$0xff] %v1122_v32  ;;  %v776_v42 = vmul.f32 %v2290_v7, %v423_v22 }
  0xe4   : > { %1465 = vst [vmem:[%s2330_s18 + $0x510] sm:$0xff] %v1123_v33  ;;  %1466 = vst [vmem:[%s2330_s18 + $0x518] sm:$0xff] %v1124_v34  ;;  %v777_v43 = vmul.f32 %v2295_v10, %v424_v23  ;;  %v778_v44 = vmul.f32 %v2290_v7, %v425_v28  ;;  %v779_v45 = vmul.f32 %v2295_v10, %v426_v29  ;;  %v444_v23 = vld [vmem:[%s2283_s11 + $0x5e8] sm:$0xff]  ;;  %v447_v34 = vld [vmem:[%s2283_s11 + $0x600] sm:$0xff] }
  0xe5   : > { %1467 = vst [vmem:[%s2330_s18 + $0x520] sm:$0xff] %v1125_v38  ;;  %1468 = vst [vmem:[%s2330_s18 + $0x528] sm:$0xff] %v1126_v39  ;;  %v780_v48 = vmul.f32 %v2290_v7, %v427_v30  ;;  %v781_v49 = vmul.f32 %v2295_v10, %v428_v35  ;;  %v782_v50 = vmul.f32 %v2290_v7, %v429_v36  ;;  %v448_v35 = vld [vmem:[%s2283_s11 + $0x608] sm:$0xff] }
  0xe6   : > { %1469 = vst [vmem:[%s2330_s18 + $0x530] sm:$0xff] %v1127_v40  ;;  %1470 = vst [vmem:[%s2330_s18 + $0x538] sm:$0xff] %v1128_v41  ;;  %v783_v51 = vmul.f32 %v2295_v10, %v430_v37  ;;  %v1129_v55 = vadd.f32 %v2292_v8, %v776_v42  ;;  %v1130_v56 = vadd.f32 %v2297_v11, %v777_v43  ;;  %v449_v40 = vld [vmem:[%s2283_s11 + $0x610] sm:$0xff]  ;;  %v450_v41 = vld [vmem:[%s2283_s11 + $0x618] sm:$0xff] }
  0xe7   : > { %v1131_v57 = vadd.f32 %v2292_v8, %v778_v44  ;;  %v1132_v58 = vadd.f32 %v2297_v11, %v779_v45  ;;  %v1133_v62 = vadd.f32 %v2292_v8, %v780_v48  ;;  %v1134_v63 = vadd.f32 %v2297_v11, %v781_v49  ;;  %v451_v42 = vld [vmem:[%s2283_s11 + $0x620] sm:$0xff]  ;;  %v453_v48 = vld [vmem:[%s2283_s11 + $0x630] sm:$0xff]  ;;  %v454_v49 = vld [vmem:[%s2283_s11 + $0x638] sm:$0xff] }
  0xe8   : > { %v1135_v0 = vadd.f32 %v2292_v8, %v782_v50  ;;  %v1136_v1 = vadd.f32 %v2297_v11, %v783_v51  ;;  %1471 = vst [vmem:[%s2330_s18 + $0x540] sm:$0xff] %v1129_v55  ;;  %1472 = vst [vmem:[%s2330_s18 + $0x548] sm:$0xff] %v1130_v56  ;;  %v784_v2 = vmul.f32 %v2290_v7, %v431_v46 }
  0xe9   : > { %1473 = vst [vmem:[%s2330_s18 + $0x550] sm:$0xff] %v1131_v57  ;;  %1474 = vst [vmem:[%s2330_s18 + $0x558] sm:$0xff] %v1132_v58  ;;  %v785_v3 = vmul.f32 %v2295_v10, %v432_v47  ;;  %v786_v4 = vmul.f32 %v2290_v7, %v433_v52  ;;  %v787_v5 = vmul.f32 %v2295_v10, %v434_v53  ;;  %v452_v47 = vld [vmem:[%s2283_s11 + $0x628] sm:$0xff]  ;;  %v455_v58 = vld [vmem:[%s2283_s11 + $0x640] sm:$0xff] }
  0xea   : > { %1475 = vst [vmem:[%s2330_s18 + $0x560] sm:$0xff] %v1133_v62  ;;  %1476 = vst [vmem:[%s2330_s18 + $0x568] sm:$0xff] %v1134_v63  ;;  %v788_v12 = vmul.f32 %v2290_v7, %v435_v54  ;;  %v789_v13 = vmul.f32 %v2295_v10, %v436_v59  ;;  %v790_v14 = vmul.f32 %v2290_v7, %v437_v60  ;;  %v456_v59 = vld [vmem:[%s2283_s11 + $0x648] sm:$0xff] }
  0xeb   : > { %1477 = vst [vmem:[%s2330_s18 + $0x570] sm:$0xff] %v1135_v0  ;;  %1478 = vst [vmem:[%s2330_s18 + $0x578] sm:$0xff] %v1136_v1  ;;  %v791_v15 = vmul.f32 %v2295_v10, %v438_v61  ;;  %v1137_v19 = vadd.f32 %v2292_v8, %v784_v2  ;;  %v1138_v20 = vadd.f32 %v2297_v11, %v785_v3  ;;  %v457_v0 = vld [vmem:[%s2283_s11 + $0x650] sm:$0xff]  ;;  %v458_v1 = vld [vmem:[%s2283_s11 + $0x658] sm:$0xff] }
  0xec   : > { %v1139_v21 = vadd.f32 %v2292_v8, %v786_v4  ;;  %v1140_v22 = vadd.f32 %v2297_v11, %v787_v5  ;;  %v1141_v26 = vadd.f32 %v2292_v8, %v788_v12  ;;  %v1142_v27 = vadd.f32 %v2297_v11, %v789_v13  ;;  %v459_v2 = vld [vmem:[%s2283_s11 + $0x660] sm:$0xff]  ;;  %v461_v12 = vld [vmem:[%s2283_s11 + $0x670] sm:$0xff]  ;;  %v462_v13 = vld [vmem:[%s2283_s11 + $0x678] sm:$0xff] }
  0xed   : > { %v1143_v28 = vadd.f32 %v2292_v8, %v790_v14  ;;  %v1144_v29 = vadd.f32 %v2297_v11, %v791_v15  ;;  %1479 = vst [vmem:[%s2330_s18 + $0x580] sm:$0xff] %v1137_v19  ;;  %1480 = vst [vmem:[%s2330_s18 + $0x588] sm:$0xff] %v1138_v20  ;;  %v792_v30 = vmul.f32 %v2290_v7, %v439_v6 }
  0xee   : > { %1481 = vst [vmem:[%s2330_s18 + $0x590] sm:$0xff] %v1139_v21  ;;  %1482 = vst [vmem:[%s2330_s18 + $0x598] sm:$0xff] %v1140_v22  ;;  %v793_v31 = vmul.f32 %v2295_v10, %v440_v9  ;;  %v794_v32 = vmul.f32 %v2290_v7, %v441_v16  ;;  %v795_v33 = vmul.f32 %v2295_v10, %v442_v17  ;;  %v460_v9 = vld [vmem:[%s2283_s11 + $0x668] sm:$0xff]  ;;  %v463_v22 = vld [vmem:[%s2283_s11 + $0x680] sm:$0xff] }
  0xef   : > { %1483 = vst [vmem:[%s2330_s18 + $0x5a0] sm:$0xff] %v1141_v26  ;;  %1484 = vst [vmem:[%s2330_s18 + $0x5a8] sm:$0xff] %v1142_v27  ;;  %v796_v36 = vmul.f32 %v2290_v7, %v443_v18  ;;  %v797_v37 = vmul.f32 %v2295_v10, %v444_v23  ;;  %v798_v38 = vmul.f32 %v2290_v7, %v445_v24  ;;  %v464_v23 = vld [vmem:[%s2283_s11 + $0x688] sm:$0xff] }
  0xf0   : > { %1485 = vst [vmem:[%s2330_s18 + $0x5b0] sm:$0xff] %v1143_v28  ;;  %1486 = vst [vmem:[%s2330_s18 + $0x5b8] sm:$0xff] %v1144_v29  ;;  %v799_v39 = vmul.f32 %v2295_v10, %v446_v25  ;;  %v1145_v43 = vadd.f32 %v2292_v8, %v792_v30  ;;  %v1146_v44 = vadd.f32 %v2297_v11, %v793_v31  ;;  %v465_v28 = vld [vmem:[%s2283_s11 + $0x690] sm:$0xff]  ;;  %v466_v29 = vld [vmem:[%s2283_s11 + $0x698] sm:$0xff] }
  0xf1   : > { %v1147_v45 = vadd.f32 %v2292_v8, %v794_v32  ;;  %v1148_v46 = vadd.f32 %v2297_v11, %v795_v33  ;;  %v1149_v50 = vadd.f32 %v2292_v8, %v796_v36  ;;  %v1150_v51 = vadd.f32 %v2297_v11, %v797_v37  ;;  %v467_v30 = vld [vmem:[%s2283_s11 + $0x6a0] sm:$0xff]  ;;  %v469_v36 = vld [vmem:[%s2283_s11 + $0x6b0] sm:$0xff]  ;;  %v470_v37 = vld [vmem:[%s2283_s11 + $0x6b8] sm:$0xff] }
  0xf2   : > { %v1151_v52 = vadd.f32 %v2292_v8, %v798_v38  ;;  %v1152_v53 = vadd.f32 %v2297_v11, %v799_v39  ;;  %1487 = vst [vmem:[%s2330_s18 + $0x5c0] sm:$0xff] %v1145_v43  ;;  %1488 = vst [vmem:[%s2330_s18 + $0x5c8] sm:$0xff] %v1146_v44  ;;  %v800_v54 = vmul.f32 %v2290_v7, %v447_v34 }
  0xf3   : > { %1489 = vst [vmem:[%s2330_s18 + $0x5d0] sm:$0xff] %v1147_v45  ;;  %1490 = vst [vmem:[%s2330_s18 + $0x5d8] sm:$0xff] %v1148_v46  ;;  %v801_v55 = vmul.f32 %v2295_v10, %v448_v35  ;;  %v802_v56 = vmul.f32 %v2290_v7, %v449_v40  ;;  %v803_v57 = vmul.f32 %v2295_v10, %v450_v41  ;;  %v468_v35 = vld [vmem:[%s2283_s11 + $0x6a8] sm:$0xff]  ;;  %v471_v46 = vld [vmem:[%s2283_s11 + $0x6c0] sm:$0xff] }
  0xf4   : > { %1491 = vst [vmem:[%s2330_s18 + $0x5e0] sm:$0xff] %v1149_v50  ;;  %1492 = vst [vmem:[%s2330_s18 + $0x5e8] sm:$0xff] %v1150_v51  ;;  %v804_v60 = vmul.f32 %v2290_v7, %v451_v42  ;;  %v805_v61 = vmul.f32 %v2295_v10, %v452_v47  ;;  %v806_v62 = vmul.f32 %v2290_v7, %v453_v48  ;;  %v472_v47 = vld [vmem:[%s2283_s11 + $0x6c8] sm:$0xff] }
  0xf5   : > { %1493 = vst [vmem:[%s2330_s18 + $0x5f0] sm:$0xff] %v1151_v52  ;;  %1494 = vst [vmem:[%s2330_s18 + $0x5f8] sm:$0xff] %v1152_v53  ;;  %v807_v63 = vmul.f32 %v2295_v10, %v454_v49  ;;  %v1153_v3 = vadd.f32 %v2292_v8, %v800_v54  ;;  %v1154_v4 = vadd.f32 %v2297_v11, %v801_v55  ;;  %v473_v52 = vld [vmem:[%s2283_s11 + $0x6d0] sm:$0xff]  ;;  %v474_v53 = vld [vmem:[%s2283_s11 + $0x6d8] sm:$0xff] }
  0xf6   : > { %v1155_v5 = vadd.f32 %v2292_v8, %v802_v56  ;;  %v1156_v6 = vadd.f32 %v2297_v11, %v803_v57  ;;  %v1157_v14 = vadd.f32 %v2292_v8, %v804_v60  ;;  %v1158_v15 = vadd.f32 %v2297_v11, %v805_v61  ;;  %v475_v54 = vld [vmem:[%s2283_s11 + $0x6e0] sm:$0xff]  ;;  %v477_v60 = vld [vmem:[%s2283_s11 + $0x6f0] sm:$0xff]  ;;  %v478_v61 = vld [vmem:[%s2283_s11 + $0x6f8] sm:$0xff] }
  0xf7   : > { %v1159_v16 = vadd.f32 %v2292_v8, %v806_v62  ;;  %v1160_v17 = vadd.f32 %v2297_v11, %v807_v63  ;;  %1495 = vst [vmem:[%s2330_s18 + $0x600] sm:$0xff] %v1153_v3  ;;  %1496 = vst [vmem:[%s2330_s18 + $0x608] sm:$0xff] %v1154_v4  ;;  %v808_v18 = vmul.f32 %v2290_v7, %v455_v58 }
  0xf8   : > { %1497 = vst [vmem:[%s2330_s18 + $0x610] sm:$0xff] %v1155_v5  ;;  %1498 = vst [vmem:[%s2330_s18 + $0x618] sm:$0xff] %v1156_v6  ;;  %v809_v19 = vmul.f32 %v2295_v10, %v456_v59  ;;  %v810_v20 = vmul.f32 %v2290_v7, %v457_v0  ;;  %v811_v21 = vmul.f32 %v2295_v10, %v458_v1  ;;  %v476_v59 = vld [vmem:[%s2283_s11 + $0x6e8] sm:$0xff]  ;;  %v479_v6 = vld [vmem:[%s2283_s11 + $0x700] sm:$0xff] }
  0xf9   : > { %1499 = vst [vmem:[%s2330_s18 + $0x620] sm:$0xff] %v1157_v14  ;;  %1500 = vst [vmem:[%s2330_s18 + $0x628] sm:$0xff] %v1158_v15  ;;  %v812_v24 = vmul.f32 %v2290_v7, %v459_v2  ;;  %v813_v25 = vmul.f32 %v2295_v10, %v460_v9  ;;  %v814_v26 = vmul.f32 %v2290_v7, %v461_v12  ;;  %v480_v9 = vld [vmem:[%s2283_s11 + $0x708] sm:$0xff] }
  0xfa   : > { %1501 = vst [vmem:[%s2330_s18 + $0x630] sm:$0xff] %v1159_v16  ;;  %1502 = vst [vmem:[%s2330_s18 + $0x638] sm:$0xff] %v1160_v17  ;;  %v815_v27 = vmul.f32 %v2295_v10, %v462_v13  ;;  %v1161_v31 = vadd.f32 %v2292_v8, %v808_v18  ;;  %v1162_v32 = vadd.f32 %v2297_v11, %v809_v19  ;;  %v481_v16 = vld [vmem:[%s2283_s11 + $0x710] sm:$0xff]  ;;  %v482_v17 = vld [vmem:[%s2283_s11 + $0x718] sm:$0xff] }
  0xfb   : > { %v1163_v33 = vadd.f32 %v2292_v8, %v810_v20  ;;  %v1164_v34 = vadd.f32 %v2297_v11, %v811_v21  ;;  %v1165_v38 = vadd.f32 %v2292_v8, %v812_v24  ;;  %v1166_v39 = vadd.f32 %v2297_v11, %v813_v25  ;;  %v483_v18 = vld [vmem:[%s2283_s11 + $0x720] sm:$0xff]  ;;  %v485_v24 = vld [vmem:[%s2283_s11 + $0x730] sm:$0xff]  ;;  %v486_v25 = vld [vmem:[%s2283_s11 + $0x738] sm:$0xff] }
  0xfc   : > { %v1167_v40 = vadd.f32 %v2292_v8, %v814_v26  ;;  %v1168_v41 = vadd.f32 %v2297_v11, %v815_v27  ;;  %1503 = vst [vmem:[%s2330_s18 + $0x640] sm:$0xff] %v1161_v31  ;;  %1504 = vst [vmem:[%s2330_s18 + $0x648] sm:$0xff] %v1162_v32  ;;  %v816_v42 = vmul.f32 %v2290_v7, %v463_v22 }
  0xfd   : > { %1505 = vst [vmem:[%s2330_s18 + $0x650] sm:$0xff] %v1163_v33  ;;  %1506 = vst [vmem:[%s2330_s18 + $0x658] sm:$0xff] %v1164_v34  ;;  %v817_v43 = vmul.f32 %v2295_v10, %v464_v23  ;;  %v818_v44 = vmul.f32 %v2290_v7, %v465_v28  ;;  %v819_v45 = vmul.f32 %v2295_v10, %v466_v29  ;;  %v484_v23 = vld [vmem:[%s2283_s11 + $0x728] sm:$0xff]  ;;  %v487_v34 = vld [vmem:[%s2283_s11 + $0x740] sm:$0xff] }
  0xfe   : > { %1507 = vst [vmem:[%s2330_s18 + $0x660] sm:$0xff] %v1165_v38  ;;  %1508 = vst [vmem:[%s2330_s18 + $0x668] sm:$0xff] %v1166_v39  ;;  %v820_v48 = vmul.f32 %v2290_v7, %v467_v30  ;;  %v821_v49 = vmul.f32 %v2295_v10, %v468_v35  ;;  %v822_v50 = vmul.f32 %v2290_v7, %v469_v36  ;;  %v488_v35 = vld [vmem:[%s2283_s11 + $0x748] sm:$0xff] }
  0xff   : > { %1509 = vst [vmem:[%s2330_s18 + $0x670] sm:$0xff] %v1167_v40  ;;  %1510 = vst [vmem:[%s2330_s18 + $0x678] sm:$0xff] %v1168_v41  ;;  %v823_v51 = vmul.f32 %v2295_v10, %v470_v37  ;;  %v1169_v55 = vadd.f32 %v2292_v8, %v816_v42  ;;  %v1170_v56 = vadd.f32 %v2297_v11, %v817_v43  ;;  %v489_v40 = vld [vmem:[%s2283_s11 + $0x750] sm:$0xff]  ;;  %v490_v41 = vld [vmem:[%s2283_s11 + $0x758] sm:$0xff] }
 0x100   : > { %v1171_v57 = vadd.f32 %v2292_v8, %v818_v44  ;;  %v1172_v58 = vadd.f32 %v2297_v11, %v819_v45  ;;  %v1173_v62 = vadd.f32 %v2292_v8, %v820_v48  ;;  %v1174_v63 = vadd.f32 %v2297_v11, %v821_v49  ;;  %v491_v42 = vld [vmem:[%s2283_s11 + $0x760] sm:$0xff]  ;;  %v493_v48 = vld [vmem:[%s2283_s11 + $0x770] sm:$0xff]  ;;  %v494_v49 = vld [vmem:[%s2283_s11 + $0x778] sm:$0xff] }
 0x101   : > { %v1175_v0 = vadd.f32 %v2292_v8, %v822_v50  ;;  %v1176_v1 = vadd.f32 %v2297_v11, %v823_v51  ;;  %1511 = vst [vmem:[%s2330_s18 + $0x680] sm:$0xff] %v1169_v55  ;;  %1512 = vst [vmem:[%s2330_s18 + $0x688] sm:$0xff] %v1170_v56  ;;  %v824_v2 = vmul.f32 %v2290_v7, %v471_v46 }
 0x102   : > { %1513 = vst [vmem:[%s2330_s18 + $0x690] sm:$0xff] %v1171_v57  ;;  %1514 = vst [vmem:[%s2330_s18 + $0x698] sm:$0xff] %v1172_v58  ;;  %v825_v3 = vmul.f32 %v2295_v10, %v472_v47  ;;  %v826_v4 = vmul.f32 %v2290_v7, %v473_v52  ;;  %v827_v5 = vmul.f32 %v2295_v10, %v474_v53  ;;  %v492_v47 = vld [vmem:[%s2283_s11 + $0x768] sm:$0xff]  ;;  %v495_v58 = vld [vmem:[%s2283_s11 + $0x780] sm:$0xff] }
 0x103   : > { %1515 = vst [vmem:[%s2330_s18 + $0x6a0] sm:$0xff] %v1173_v62  ;;  %1516 = vst [vmem:[%s2330_s18 + $0x6a8] sm:$0xff] %v1174_v63  ;;  %v828_v12 = vmul.f32 %v2290_v7, %v475_v54  ;;  %v829_v13 = vmul.f32 %v2295_v10, %v476_v59  ;;  %v830_v14 = vmul.f32 %v2290_v7, %v477_v60  ;;  %v496_v59 = vld [vmem:[%s2283_s11 + $0x788] sm:$0xff] }
 0x104   : > { %1517 = vst [vmem:[%s2330_s18 + $0x6b0] sm:$0xff] %v1175_v0  ;;  %1518 = vst [vmem:[%s2330_s18 + $0x6b8] sm:$0xff] %v1176_v1  ;;  %v831_v15 = vmul.f32 %v2295_v10, %v478_v61  ;;  %v1177_v19 = vadd.f32 %v2292_v8, %v824_v2  ;;  %v1178_v20 = vadd.f32 %v2297_v11, %v825_v3  ;;  %v497_v0 = vld [vmem:[%s2283_s11 + $0x790] sm:$0xff]  ;;  %v498_v1 = vld [vmem:[%s2283_s11 + $0x798] sm:$0xff] }
 0x105   : > { %v1179_v21 = vadd.f32 %v2292_v8, %v826_v4  ;;  %v1180_v22 = vadd.f32 %v2297_v11, %v827_v5  ;;  %v1181_v26 = vadd.f32 %v2292_v8, %v828_v12  ;;  %v1182_v27 = vadd.f32 %v2297_v11, %v829_v13  ;;  %v499_v2 = vld [vmem:[%s2283_s11 + $0x7a0] sm:$0xff]  ;;  %v501_v12 = vld [vmem:[%s2283_s11 + $0x7b0] sm:$0xff]  ;;  %v502_v13 = vld [vmem:[%s2283_s11 + $0x7b8] sm:$0xff] }
 0x106   : > { %v1183_v28 = vadd.f32 %v2292_v8, %v830_v14  ;;  %v1184_v29 = vadd.f32 %v2297_v11, %v831_v15  ;;  %1519 = vst [vmem:[%s2330_s18 + $0x6c0] sm:$0xff] %v1177_v19  ;;  %1520 = vst [vmem:[%s2330_s18 + $0x6c8] sm:$0xff] %v1178_v20  ;;  %v832_v30 = vmul.f32 %v2290_v7, %v479_v6 }
 0x107   : > { %1521 = vst [vmem:[%s2330_s18 + $0x6d0] sm:$0xff] %v1179_v21  ;;  %1522 = vst [vmem:[%s2330_s18 + $0x6d8] sm:$0xff] %v1180_v22  ;;  %v833_v31 = vmul.f32 %v2295_v10, %v480_v9  ;;  %v834_v32 = vmul.f32 %v2290_v7, %v481_v16  ;;  %v835_v33 = vmul.f32 %v2295_v10, %v482_v17  ;;  %v500_v9 = vld [vmem:[%s2283_s11 + $0x7a8] sm:$0xff]  ;;  %v503_v22 = vld [vmem:[%s2283_s11 + $0x7c0] sm:$0xff] }
 0x108   : > { %1523 = vst [vmem:[%s2330_s18 + $0x6e0] sm:$0xff] %v1181_v26  ;;  %1524 = vst [vmem:[%s2330_s18 + $0x6e8] sm:$0xff] %v1182_v27  ;;  %v836_v36 = vmul.f32 %v2290_v7, %v483_v18  ;;  %v837_v37 = vmul.f32 %v2295_v10, %v484_v23  ;;  %v838_v38 = vmul.f32 %v2290_v7, %v485_v24  ;;  %v504_v23 = vld [vmem:[%s2283_s11 + $0x7c8] sm:$0xff] }
 0x109   : > { %1525 = vst [vmem:[%s2330_s18 + $0x6f0] sm:$0xff] %v1183_v28  ;;  %1526 = vst [vmem:[%s2330_s18 + $0x6f8] sm:$0xff] %v1184_v29  ;;  %v839_v39 = vmul.f32 %v2295_v10, %v486_v25  ;;  %v1185_v43 = vadd.f32 %v2292_v8, %v832_v30  ;;  %v1186_v44 = vadd.f32 %v2297_v11, %v833_v31  ;;  %v505_v28 = vld [vmem:[%s2283_s11 + $0x7d0] sm:$0xff]  ;;  %v506_v29 = vld [vmem:[%s2283_s11 + $0x7d8] sm:$0xff] }
 0x10a   : > { %v1187_v45 = vadd.f32 %v2292_v8, %v834_v32  ;;  %v1188_v46 = vadd.f32 %v2297_v11, %v835_v33  ;;  %v1189_v50 = vadd.f32 %v2292_v8, %v836_v36  ;;  %v1190_v51 = vadd.f32 %v2297_v11, %v837_v37  ;;  %v507_v30 = vld [vmem:[%s2283_s11 + $0x7e0] sm:$0xff]  ;;  %v509_v36 = vld [vmem:[%s2283_s11 + $0x7f0] sm:$0xff]  ;;  %v510_v37 = vld [vmem:[%s2283_s11 + $0x7f8] sm:$0xff] }
 0x10b   : > { %v1191_v52 = vadd.f32 %v2292_v8, %v838_v38  ;;  %v1192_v53 = vadd.f32 %v2297_v11, %v839_v39  ;;  %1527 = vst [vmem:[%s2330_s18 + $0x700] sm:$0xff] %v1185_v43  ;;  %1528 = vst [vmem:[%s2330_s18 + $0x708] sm:$0xff] %v1186_v44  ;;  %v840_v54 = vmul.f32 %v2290_v7, %v487_v34 }
 0x10c   : > { %1529 = vst [vmem:[%s2330_s18 + $0x710] sm:$0xff] %v1187_v45  ;;  %1530 = vst [vmem:[%s2330_s18 + $0x718] sm:$0xff] %v1188_v46  ;;  %v841_v55 = vmul.f32 %v2295_v10, %v488_v35  ;;  %v842_v56 = vmul.f32 %v2290_v7, %v489_v40  ;;  %v843_v57 = vmul.f32 %v2295_v10, %v490_v41  ;;  %v508_v35 = vld [vmem:[%s2283_s11 + $0x7e8] sm:$0xff]  ;;  %v511_v46 = vld [vmem:[%s2283_s11 + $0x800] sm:$0xff] }
 0x10d   : > { %1531 = vst [vmem:[%s2330_s18 + $0x720] sm:$0xff] %v1189_v50  ;;  %1532 = vst [vmem:[%s2330_s18 + $0x728] sm:$0xff] %v1190_v51  ;;  %v844_v60 = vmul.f32 %v2290_v7, %v491_v42  ;;  %v845_v61 = vmul.f32 %v2295_v10, %v492_v47  ;;  %v846_v62 = vmul.f32 %v2290_v7, %v493_v48  ;;  %v512_v47 = vld [vmem:[%s2283_s11 + $0x808] sm:$0xff] }
 0x10e   : > { %1533 = vst [vmem:[%s2330_s18 + $0x730] sm:$0xff] %v1191_v52  ;;  %1534 = vst [vmem:[%s2330_s18 + $0x738] sm:$0xff] %v1192_v53  ;;  %v847_v63 = vmul.f32 %v2295_v10, %v494_v49  ;;  %v1193_v3 = vadd.f32 %v2292_v8, %v840_v54  ;;  %v1194_v4 = vadd.f32 %v2297_v11, %v841_v55  ;;  %v513_v52 = vld [vmem:[%s2283_s11 + $0x810] sm:$0xff]  ;;  %v514_v53 = vld [vmem:[%s2283_s11 + $0x818] sm:$0xff] }
 0x10f   : > { %v1195_v5 = vadd.f32 %v2292_v8, %v842_v56  ;;  %v1196_v6 = vadd.f32 %v2297_v11, %v843_v57  ;;  %v1197_v14 = vadd.f32 %v2292_v8, %v844_v60  ;;  %v1198_v15 = vadd.f32 %v2297_v11, %v845_v61  ;;  %v515_v54 = vld [vmem:[%s2283_s11 + $0x820] sm:$0xff]  ;;  %v517_v60 = vld [vmem:[%s2283_s11 + $0x830] sm:$0xff]  ;;  %v518_v61 = vld [vmem:[%s2283_s11 + $0x838] sm:$0xff] }
 0x110   : > { %v1199_v16 = vadd.f32 %v2292_v8, %v846_v62  ;;  %v1200_v17 = vadd.f32 %v2297_v11, %v847_v63  ;;  %1535 = vst [vmem:[%s2330_s18 + $0x740] sm:$0xff] %v1193_v3  ;;  %1536 = vst [vmem:[%s2330_s18 + $0x748] sm:$0xff] %v1194_v4  ;;  %v848_v18 = vmul.f32 %v2290_v7, %v495_v58 }
 0x111   : > { %1537 = vst [vmem:[%s2330_s18 + $0x750] sm:$0xff] %v1195_v5  ;;  %1538 = vst [vmem:[%s2330_s18 + $0x758] sm:$0xff] %v1196_v6  ;;  %v849_v19 = vmul.f32 %v2295_v10, %v496_v59  ;;  %v850_v20 = vmul.f32 %v2290_v7, %v497_v0  ;;  %v851_v21 = vmul.f32 %v2295_v10, %v498_v1  ;;  %v516_v59 = vld [vmem:[%s2283_s11 + $0x828] sm:$0xff]  ;;  %v519_v6 = vld [vmem:[%s2283_s11 + $0x840] sm:$0xff] }
 0x112   : > { %1539 = vst [vmem:[%s2330_s18 + $0x760] sm:$0xff] %v1197_v14  ;;  %1540 = vst [vmem:[%s2330_s18 + $0x768] sm:$0xff] %v1198_v15  ;;  %v852_v24 = vmul.f32 %v2290_v7, %v499_v2  ;;  %v853_v25 = vmul.f32 %v2295_v10, %v500_v9  ;;  %v854_v26 = vmul.f32 %v2290_v7, %v501_v12  ;;  %v520_v9 = vld [vmem:[%s2283_s11 + $0x848] sm:$0xff] }
 0x113   : > { %1541 = vst [vmem:[%s2330_s18 + $0x770] sm:$0xff] %v1199_v16  ;;  %1542 = vst [vmem:[%s2330_s18 + $0x778] sm:$0xff] %v1200_v17  ;;  %v855_v27 = vmul.f32 %v2295_v10, %v502_v13  ;;  %v1201_v31 = vadd.f32 %v2292_v8, %v848_v18  ;;  %v1202_v32 = vadd.f32 %v2297_v11, %v849_v19  ;;  %v521_v16 = vld [vmem:[%s2283_s11 + $0x850] sm:$0xff]  ;;  %v522_v17 = vld [vmem:[%s2283_s11 + $0x858] sm:$0xff] }
 0x114   : > { %v1203_v33 = vadd.f32 %v2292_v8, %v850_v20  ;;  %v1204_v34 = vadd.f32 %v2297_v11, %v851_v21  ;;  %v1205_v38 = vadd.f32 %v2292_v8, %v852_v24  ;;  %v1206_v39 = vadd.f32 %v2297_v11, %v853_v25  ;;  %v523_v18 = vld [vmem:[%s2283_s11 + $0x860] sm:$0xff]  ;;  %v525_v24 = vld [vmem:[%s2283_s11 + $0x870] sm:$0xff]  ;;  %v526_v25 = vld [vmem:[%s2283_s11 + $0x878] sm:$0xff] }
 0x115   : > { %v1207_v40 = vadd.f32 %v2292_v8, %v854_v26  ;;  %v1208_v41 = vadd.f32 %v2297_v11, %v855_v27  ;;  %1543 = vst [vmem:[%s2330_s18 + $0x780] sm:$0xff] %v1201_v31  ;;  %1544 = vst [vmem:[%s2330_s18 + $0x788] sm:$0xff] %v1202_v32  ;;  %v856_v42 = vmul.f32 %v2290_v7, %v503_v22 }
 0x116   : > { %1545 = vst [vmem:[%s2330_s18 + $0x790] sm:$0xff] %v1203_v33  ;;  %1546 = vst [vmem:[%s2330_s18 + $0x798] sm:$0xff] %v1204_v34  ;;  %v857_v43 = vmul.f32 %v2295_v10, %v504_v23  ;;  %v858_v44 = vmul.f32 %v2290_v7, %v505_v28  ;;  %v859_v45 = vmul.f32 %v2295_v10, %v506_v29  ;;  %v524_v23 = vld [vmem:[%s2283_s11 + $0x868] sm:$0xff]  ;;  %v527_v34 = vld [vmem:[%s2283_s11 + $0x880] sm:$0xff] }
 0x117   : > { %1547 = vst [vmem:[%s2330_s18 + $0x7a0] sm:$0xff] %v1205_v38  ;;  %1548 = vst [vmem:[%s2330_s18 + $0x7a8] sm:$0xff] %v1206_v39  ;;  %v860_v48 = vmul.f32 %v2290_v7, %v507_v30  ;;  %v861_v49 = vmul.f32 %v2295_v10, %v508_v35  ;;  %v862_v50 = vmul.f32 %v2290_v7, %v509_v36  ;;  %v528_v35 = vld [vmem:[%s2283_s11 + $0x888] sm:$0xff] }
 0x118   : > { %1549 = vst [vmem:[%s2330_s18 + $0x7b0] sm:$0xff] %v1207_v40  ;;  %1550 = vst [vmem:[%s2330_s18 + $0x7b8] sm:$0xff] %v1208_v41  ;;  %v863_v51 = vmul.f32 %v2295_v10, %v510_v37  ;;  %v1209_v55 = vadd.f32 %v2292_v8, %v856_v42  ;;  %v1210_v56 = vadd.f32 %v2297_v11, %v857_v43  ;;  %v529_v40 = vld [vmem:[%s2283_s11 + $0x890] sm:$0xff]  ;;  %v530_v41 = vld [vmem:[%s2283_s11 + $0x898] sm:$0xff] }
 0x119   : > { %v1211_v57 = vadd.f32 %v2292_v8, %v858_v44  ;;  %v1212_v58 = vadd.f32 %v2297_v11, %v859_v45  ;;  %v1213_v62 = vadd.f32 %v2292_v8, %v860_v48  ;;  %v1214_v63 = vadd.f32 %v2297_v11, %v861_v49  ;;  %v531_v42 = vld [vmem:[%s2283_s11 + $0x8a0] sm:$0xff]  ;;  %v533_v48 = vld [vmem:[%s2283_s11 + $0x8b0] sm:$0xff]  ;;  %v534_v49 = vld [vmem:[%s2283_s11 + $0x8b8] sm:$0xff] }
 0x11a   : > { %v1215_v0 = vadd.f32 %v2292_v8, %v862_v50  ;;  %v1216_v1 = vadd.f32 %v2297_v11, %v863_v51  ;;  %1551 = vst [vmem:[%s2330_s18 + $0x7c0] sm:$0xff] %v1209_v55  ;;  %1552 = vst [vmem:[%s2330_s18 + $0x7c8] sm:$0xff] %v1210_v56  ;;  %v864_v2 = vmul.f32 %v2290_v7, %v511_v46 }
 0x11b   : > { %1553 = vst [vmem:[%s2330_s18 + $0x7d0] sm:$0xff] %v1211_v57  ;;  %1554 = vst [vmem:[%s2330_s18 + $0x7d8] sm:$0xff] %v1212_v58  ;;  %v865_v3 = vmul.f32 %v2295_v10, %v512_v47  ;;  %v866_v4 = vmul.f32 %v2290_v7, %v513_v52  ;;  %v867_v5 = vmul.f32 %v2295_v10, %v514_v53  ;;  %v532_v47 = vld [vmem:[%s2283_s11 + $0x8a8] sm:$0xff]  ;;  %v535_v58 = vld [vmem:[%s2283_s11 + $0x8c0] sm:$0xff] }
 0x11c   : > { %1555 = vst [vmem:[%s2330_s18 + $0x7e0] sm:$0xff] %v1213_v62  ;;  %1556 = vst [vmem:[%s2330_s18 + $0x7e8] sm:$0xff] %v1214_v63  ;;  %v868_v12 = vmul.f32 %v2290_v7, %v515_v54  ;;  %v869_v13 = vmul.f32 %v2295_v10, %v516_v59  ;;  %v870_v14 = vmul.f32 %v2290_v7, %v517_v60  ;;  %v536_v59 = vld [vmem:[%s2283_s11 + $0x8c8] sm:$0xff] }
 0x11d   : > { %1557 = vst [vmem:[%s2330_s18 + $0x7f0] sm:$0xff] %v1215_v0  ;;  %1558 = vst [vmem:[%s2330_s18 + $0x7f8] sm:$0xff] %v1216_v1  ;;  %v871_v15 = vmul.f32 %v2295_v10, %v518_v61  ;;  %v1217_v19 = vadd.f32 %v2292_v8, %v864_v2  ;;  %v1218_v20 = vadd.f32 %v2297_v11, %v865_v3  ;;  %v537_v0 = vld [vmem:[%s2283_s11 + $0x8d0] sm:$0xff]  ;;  %v538_v1 = vld [vmem:[%s2283_s11 + $0x8d8] sm:$0xff] }
 0x11e   : > { %v1219_v21 = vadd.f32 %v2292_v8, %v866_v4  ;;  %v1220_v22 = vadd.f32 %v2297_v11, %v867_v5  ;;  %v1221_v26 = vadd.f32 %v2292_v8, %v868_v12  ;;  %v1222_v27 = vadd.f32 %v2297_v11, %v869_v13  ;;  %v539_v2 = vld [vmem:[%s2283_s11 + $0x8e0] sm:$0xff]  ;;  %v541_v12 = vld [vmem:[%s2283_s11 + $0x8f0] sm:$0xff]  ;;  %v542_v13 = vld [vmem:[%s2283_s11 + $0x8f8] sm:$0xff] }
 0x11f   : > { %v1223_v28 = vadd.f32 %v2292_v8, %v870_v14  ;;  %v1224_v29 = vadd.f32 %v2297_v11, %v871_v15  ;;  %1559 = vst [vmem:[%s2330_s18 + $0x800] sm:$0xff] %v1217_v19  ;;  %1560 = vst [vmem:[%s2330_s18 + $0x808] sm:$0xff] %v1218_v20  ;;  %v872_v30 = vmul.f32 %v2290_v7, %v519_v6 }
 0x120   : > { %1561 = vst [vmem:[%s2330_s18 + $0x810] sm:$0xff] %v1219_v21  ;;  %1562 = vst [vmem:[%s2330_s18 + $0x818] sm:$0xff] %v1220_v22  ;;  %v873_v31 = vmul.f32 %v2295_v10, %v520_v9  ;;  %v874_v32 = vmul.f32 %v2290_v7, %v521_v16  ;;  %v875_v33 = vmul.f32 %v2295_v10, %v522_v17  ;;  %v540_v9 = vld [vmem:[%s2283_s11 + $0x8e8] sm:$0xff]  ;;  %v543_v22 = vld [vmem:[%s2283_s11 + $0x900] sm:$0xff] }
 0x121   : > { %1563 = vst [vmem:[%s2330_s18 + $0x820] sm:$0xff] %v1221_v26  ;;  %1564 = vst [vmem:[%s2330_s18 + $0x828] sm:$0xff] %v1222_v27  ;;  %v876_v36 = vmul.f32 %v2290_v7, %v523_v18  ;;  %v877_v37 = vmul.f32 %v2295_v10, %v524_v23  ;;  %v878_v38 = vmul.f32 %v2290_v7, %v525_v24  ;;  %v544_v23 = vld [vmem:[%s2283_s11 + $0x908] sm:$0xff] }
 0x122   : > { %1565 = vst [vmem:[%s2330_s18 + $0x830] sm:$0xff] %v1223_v28  ;;  %1566 = vst [vmem:[%s2330_s18 + $0x838] sm:$0xff] %v1224_v29  ;;  %v879_v39 = vmul.f32 %v2295_v10, %v526_v25  ;;  %v1225_v43 = vadd.f32 %v2292_v8, %v872_v30  ;;  %v1226_v44 = vadd.f32 %v2297_v11, %v873_v31  ;;  %v545_v28 = vld [vmem:[%s2283_s11 + $0x910] sm:$0xff]  ;;  %v546_v29 = vld [vmem:[%s2283_s11 + $0x918] sm:$0xff] }
 0x123   : > { %v1227_v45 = vadd.f32 %v2292_v8, %v874_v32  ;;  %v1228_v46 = vadd.f32 %v2297_v11, %v875_v33  ;;  %v1229_v50 = vadd.f32 %v2292_v8, %v876_v36  ;;  %v1230_v51 = vadd.f32 %v2297_v11, %v877_v37  ;;  %v547_v30 = vld [vmem:[%s2283_s11 + $0x920] sm:$0xff]  ;;  %v549_v36 = vld [vmem:[%s2283_s11 + $0x930] sm:$0xff]  ;;  %v550_v37 = vld [vmem:[%s2283_s11 + $0x938] sm:$0xff] }
 0x124   : > { %v1231_v52 = vadd.f32 %v2292_v8, %v878_v38  ;;  %v1232_v53 = vadd.f32 %v2297_v11, %v879_v39  ;;  %1567 = vst [vmem:[%s2330_s18 + $0x840] sm:$0xff] %v1225_v43  ;;  %1568 = vst [vmem:[%s2330_s18 + $0x848] sm:$0xff] %v1226_v44  ;;  %v880_v54 = vmul.f32 %v2290_v7, %v527_v34 }
 0x125   : > { %1569 = vst [vmem:[%s2330_s18 + $0x850] sm:$0xff] %v1227_v45  ;;  %1570 = vst [vmem:[%s2330_s18 + $0x858] sm:$0xff] %v1228_v46  ;;  %v881_v55 = vmul.f32 %v2295_v10, %v528_v35  ;;  %v882_v56 = vmul.f32 %v2290_v7, %v529_v40  ;;  %v883_v57 = vmul.f32 %v2295_v10, %v530_v41  ;;  %v548_v35 = vld [vmem:[%s2283_s11 + $0x928] sm:$0xff]  ;;  %v551_v46 = vld [vmem:[%s2283_s11 + $0x940] sm:$0xff] }
 0x126   : > { %1571 = vst [vmem:[%s2330_s18 + $0x860] sm:$0xff] %v1229_v50  ;;  %1572 = vst [vmem:[%s2330_s18 + $0x868] sm:$0xff] %v1230_v51  ;;  %v884_v60 = vmul.f32 %v2290_v7, %v531_v42  ;;  %v885_v61 = vmul.f32 %v2295_v10, %v532_v47  ;;  %v886_v62 = vmul.f32 %v2290_v7, %v533_v48  ;;  %v552_v47 = vld [vmem:[%s2283_s11 + $0x948] sm:$0xff] }
 0x127   : > { %1573 = vst [vmem:[%s2330_s18 + $0x870] sm:$0xff] %v1231_v52  ;;  %1574 = vst [vmem:[%s2330_s18 + $0x878] sm:$0xff] %v1232_v53  ;;  %v887_v63 = vmul.f32 %v2295_v10, %v534_v49  ;;  %v1233_v3 = vadd.f32 %v2292_v8, %v880_v54  ;;  %v1234_v4 = vadd.f32 %v2297_v11, %v881_v55  ;;  %v553_v52 = vld [vmem:[%s2283_s11 + $0x950] sm:$0xff]  ;;  %v554_v53 = vld [vmem:[%s2283_s11 + $0x958] sm:$0xff] }
 0x128   : > { %v1235_v5 = vadd.f32 %v2292_v8, %v882_v56  ;;  %v1236_v6 = vadd.f32 %v2297_v11, %v883_v57  ;;  %v1237_v14 = vadd.f32 %v2292_v8, %v884_v60  ;;  %v1238_v15 = vadd.f32 %v2297_v11, %v885_v61  ;;  %v555_v54 = vld [vmem:[%s2283_s11 + $0x960] sm:$0xff]  ;;  %v557_v60 = vld [vmem:[%s2283_s11 + $0x970] sm:$0xff]  ;;  %v558_v61 = vld [vmem:[%s2283_s11 + $0x978] sm:$0xff] }
 0x129   : > { %v1239_v16 = vadd.f32 %v2292_v8, %v886_v62  ;;  %v1240_v17 = vadd.f32 %v2297_v11, %v887_v63  ;;  %1575 = vst [vmem:[%s2330_s18 + $0x880] sm:$0xff] %v1233_v3  ;;  %1576 = vst [vmem:[%s2330_s18 + $0x888] sm:$0xff] %v1234_v4  ;;  %v888_v18 = vmul.f32 %v2290_v7, %v535_v58 }
 0x12a   : > { %1577 = vst [vmem:[%s2330_s18 + $0x890] sm:$0xff] %v1235_v5  ;;  %1578 = vst [vmem:[%s2330_s18 + $0x898] sm:$0xff] %v1236_v6  ;;  %v889_v19 = vmul.f32 %v2295_v10, %v536_v59  ;;  %v890_v20 = vmul.f32 %v2290_v7, %v537_v0  ;;  %v891_v21 = vmul.f32 %v2295_v10, %v538_v1  ;;  %v556_v59 = vld [vmem:[%s2283_s11 + $0x968] sm:$0xff]  ;;  %v559_v6 = vld [vmem:[%s2283_s11 + $0x980] sm:$0xff] }
 0x12b   : > { %1579 = vst [vmem:[%s2330_s18 + $0x8a0] sm:$0xff] %v1237_v14  ;;  %1580 = vst [vmem:[%s2330_s18 + $0x8a8] sm:$0xff] %v1238_v15  ;;  %v892_v24 = vmul.f32 %v2290_v7, %v539_v2  ;;  %v893_v25 = vmul.f32 %v2295_v10, %v540_v9  ;;  %v894_v26 = vmul.f32 %v2290_v7, %v541_v12  ;;  %v560_v9 = vld [vmem:[%s2283_s11 + $0x988] sm:$0xff] }
 0x12c   : > { %1581 = vst [vmem:[%s2330_s18 + $0x8b0] sm:$0xff] %v1239_v16  ;;  %1582 = vst [vmem:[%s2330_s18 + $0x8b8] sm:$0xff] %v1240_v17  ;;  %v895_v27 = vmul.f32 %v2295_v10, %v542_v13  ;;  %v1241_v31 = vadd.f32 %v2292_v8, %v888_v18  ;;  %v1242_v32 = vadd.f32 %v2297_v11, %v889_v19  ;;  %v561_v16 = vld [vmem:[%s2283_s11 + $0x990] sm:$0xff]  ;;  %v562_v17 = vld [vmem:[%s2283_s11 + $0x998] sm:$0xff] }
 0x12d   : > { %v1243_v33 = vadd.f32 %v2292_v8, %v890_v20  ;;  %v1244_v34 = vadd.f32 %v2297_v11, %v891_v21  ;;  %v1245_v38 = vadd.f32 %v2292_v8, %v892_v24  ;;  %v1246_v39 = vadd.f32 %v2297_v11, %v893_v25  ;;  %v563_v18 = vld [vmem:[%s2283_s11 + $0x9a0] sm:$0xff]  ;;  %v565_v24 = vld [vmem:[%s2283_s11 + $0x9b0] sm:$0xff]  ;;  %v566_v25 = vld [vmem:[%s2283_s11 + $0x9b8] sm:$0xff] }
 0x12e   : > { %v1247_v40 = vadd.f32 %v2292_v8, %v894_v26  ;;  %v1248_v41 = vadd.f32 %v2297_v11, %v895_v27  ;;  %1583 = vst [vmem:[%s2330_s18 + $0x8c0] sm:$0xff] %v1241_v31  ;;  %1584 = vst [vmem:[%s2330_s18 + $0x8c8] sm:$0xff] %v1242_v32  ;;  %v896_v42 = vmul.f32 %v2290_v7, %v543_v22 }
 0x12f   : > { %1585 = vst [vmem:[%s2330_s18 + $0x8d0] sm:$0xff] %v1243_v33  ;;  %1586 = vst [vmem:[%s2330_s18 + $0x8d8] sm:$0xff] %v1244_v34  ;;  %v897_v43 = vmul.f32 %v2295_v10, %v544_v23  ;;  %v898_v44 = vmul.f32 %v2290_v7, %v545_v28  ;;  %v899_v45 = vmul.f32 %v2295_v10, %v546_v29  ;;  %v564_v23 = vld [vmem:[%s2283_s11 + $0x9a8] sm:$0xff]  ;;  %v567_v34 = vld [vmem:[%s2283_s11 + $0x9c0] sm:$0xff] }
 0x130   : > { %1587 = vst [vmem:[%s2330_s18 + $0x8e0] sm:$0xff] %v1245_v38  ;;  %1588 = vst [vmem:[%s2330_s18 + $0x8e8] sm:$0xff] %v1246_v39  ;;  %v900_v48 = vmul.f32 %v2290_v7, %v547_v30  ;;  %v901_v49 = vmul.f32 %v2295_v10, %v548_v35  ;;  %v902_v50 = vmul.f32 %v2290_v7, %v549_v36  ;;  %v568_v35 = vld [vmem:[%s2283_s11 + $0x9c8] sm:$0xff] }
 0x131   : > { %1589 = vst [vmem:[%s2330_s18 + $0x8f0] sm:$0xff] %v1247_v40  ;;  %1590 = vst [vmem:[%s2330_s18 + $0x8f8] sm:$0xff] %v1248_v41  ;;  %v903_v51 = vmul.f32 %v2295_v10, %v550_v37  ;;  %v1249_v55 = vadd.f32 %v2292_v8, %v896_v42  ;;  %v1250_v56 = vadd.f32 %v2297_v11, %v897_v43  ;;  %v569_v40 = vld [vmem:[%s2283_s11 + $0x9d0] sm:$0xff]  ;;  %v570_v41 = vld [vmem:[%s2283_s11 + $0x9d8] sm:$0xff] }
 0x132   : > { %v1251_v57 = vadd.f32 %v2292_v8, %v898_v44  ;;  %v1252_v58 = vadd.f32 %v2297_v11, %v899_v45  ;;  %v1253_v62 = vadd.f32 %v2292_v8, %v900_v48  ;;  %v1254_v63 = vadd.f32 %v2297_v11, %v901_v49  ;;  %v571_v42 = vld [vmem:[%s2283_s11 + $0x9e0] sm:$0xff]  ;;  %v573_v48 = vld [vmem:[%s2283_s11 + $0x9f0] sm:$0xff]  ;;  %v574_v49 = vld [vmem:[%s2283_s11 + $0x9f8] sm:$0xff] }
 0x133   : > { %v1255_v0 = vadd.f32 %v2292_v8, %v902_v50  ;;  %v1256_v1 = vadd.f32 %v2297_v11, %v903_v51  ;;  %1591 = vst [vmem:[%s2330_s18 + $0x900] sm:$0xff] %v1249_v55  ;;  %1592 = vst [vmem:[%s2330_s18 + $0x908] sm:$0xff] %v1250_v56  ;;  %v904_v2 = vmul.f32 %v2290_v7, %v551_v46 }
 0x134   : > { %1593 = vst [vmem:[%s2330_s18 + $0x910] sm:$0xff] %v1251_v57  ;;  %1594 = vst [vmem:[%s2330_s18 + $0x918] sm:$0xff] %v1252_v58  ;;  %v905_v3 = vmul.f32 %v2295_v10, %v552_v47  ;;  %v906_v4 = vmul.f32 %v2290_v7, %v553_v52  ;;  %v907_v5 = vmul.f32 %v2295_v10, %v554_v53  ;;  %v572_v47 = vld [vmem:[%s2283_s11 + $0x9e8] sm:$0xff]  ;;  %v575_v58 = vld [vmem:[%s2283_s11 + $0xa00] sm:$0xff] }
 0x135   : > { %1595 = vst [vmem:[%s2330_s18 + $0x920] sm:$0xff] %v1253_v62  ;;  %1596 = vst [vmem:[%s2330_s18 + $0x928] sm:$0xff] %v1254_v63  ;;  %v908_v12 = vmul.f32 %v2290_v7, %v555_v54  ;;  %v909_v13 = vmul.f32 %v2295_v10, %v556_v59  ;;  %v910_v14 = vmul.f32 %v2290_v7, %v557_v60  ;;  %v576_v59 = vld [vmem:[%s2283_s11 + $0xa08] sm:$0xff] }
 0x136   : > { %1597 = vst [vmem:[%s2330_s18 + $0x930] sm:$0xff] %v1255_v0  ;;  %1598 = vst [vmem:[%s2330_s18 + $0x938] sm:$0xff] %v1256_v1  ;;  %v911_v15 = vmul.f32 %v2295_v10, %v558_v61  ;;  %v1257_v19 = vadd.f32 %v2292_v8, %v904_v2  ;;  %v1258_v20 = vadd.f32 %v2297_v11, %v905_v3  ;;  %v577_v0 = vld [vmem:[%s2283_s11 + $0xa10] sm:$0xff]  ;;  %v578_v1 = vld [vmem:[%s2283_s11 + $0xa18] sm:$0xff] }
 0x137   : > { %v1259_v21 = vadd.f32 %v2292_v8, %v906_v4  ;;  %v1260_v22 = vadd.f32 %v2297_v11, %v907_v5  ;;  %v1261_v26 = vadd.f32 %v2292_v8, %v908_v12  ;;  %v1262_v27 = vadd.f32 %v2297_v11, %v909_v13  ;;  %v579_v2 = vld [vmem:[%s2283_s11 + $0xa20] sm:$0xff]  ;;  %v581_v12 = vld [vmem:[%s2283_s11 + $0xa30] sm:$0xff]  ;;  %v582_v13 = vld [vmem:[%s2283_s11 + $0xa38] sm:$0xff] }
 0x138   : > { %v1263_v28 = vadd.f32 %v2292_v8, %v910_v14  ;;  %v1264_v29 = vadd.f32 %v2297_v11, %v911_v15  ;;  %1599 = vst [vmem:[%s2330_s18 + $0x940] sm:$0xff] %v1257_v19  ;;  %1600 = vst [vmem:[%s2330_s18 + $0x948] sm:$0xff] %v1258_v20  ;;  %v912_v30 = vmul.f32 %v2290_v7, %v559_v6 }
 0x139   : > { %1601 = vst [vmem:[%s2330_s18 + $0x950] sm:$0xff] %v1259_v21  ;;  %1602 = vst [vmem:[%s2330_s18 + $0x958] sm:$0xff] %v1260_v22  ;;  %v913_v31 = vmul.f32 %v2295_v10, %v560_v9  ;;  %v914_v32 = vmul.f32 %v2290_v7, %v561_v16  ;;  %v915_v33 = vmul.f32 %v2295_v10, %v562_v17  ;;  %v580_v9 = vld [vmem:[%s2283_s11 + $0xa28] sm:$0xff]  ;;  %v583_v22 = vld [vmem:[%s2283_s11 + $0xa40] sm:$0xff] }
 0x13a   : > { %1603 = vst [vmem:[%s2330_s18 + $0x960] sm:$0xff] %v1261_v26  ;;  %1604 = vst [vmem:[%s2330_s18 + $0x968] sm:$0xff] %v1262_v27  ;;  %v916_v36 = vmul.f32 %v2290_v7, %v563_v18  ;;  %v917_v37 = vmul.f32 %v2295_v10, %v564_v23  ;;  %v918_v38 = vmul.f32 %v2290_v7, %v565_v24  ;;  %v584_v23 = vld [vmem:[%s2283_s11 + $0xa48] sm:$0xff] }
 0x13b   : > { %1605 = vst [vmem:[%s2330_s18 + $0x970] sm:$0xff] %v1263_v28  ;;  %1606 = vst [vmem:[%s2330_s18 + $0x978] sm:$0xff] %v1264_v29  ;;  %v919_v39 = vmul.f32 %v2295_v10, %v566_v25  ;;  %v1265_v43 = vadd.f32 %v2292_v8, %v912_v30  ;;  %v1266_v44 = vadd.f32 %v2297_v11, %v913_v31  ;;  %v585_v28 = vld [vmem:[%s2283_s11 + $0xa50] sm:$0xff]  ;;  %v586_v29 = vld [vmem:[%s2283_s11 + $0xa58] sm:$0xff] }
 0x13c   : > { %v1267_v45 = vadd.f32 %v2292_v8, %v914_v32  ;;  %v1268_v46 = vadd.f32 %v2297_v11, %v915_v33  ;;  %v1269_v50 = vadd.f32 %v2292_v8, %v916_v36  ;;  %v1270_v51 = vadd.f32 %v2297_v11, %v917_v37  ;;  %v587_v30 = vld [vmem:[%s2283_s11 + $0xa60] sm:$0xff]  ;;  %v589_v36 = vld [vmem:[%s2283_s11 + $0xa70] sm:$0xff]  ;;  %v590_v37 = vld [vmem:[%s2283_s11 + $0xa78] sm:$0xff] }
 0x13d   : > { %v1271_v52 = vadd.f32 %v2292_v8, %v918_v38  ;;  %v1272_v53 = vadd.f32 %v2297_v11, %v919_v39  ;;  %1607 = vst [vmem:[%s2330_s18 + $0x980] sm:$0xff] %v1265_v43  ;;  %1608 = vst [vmem:[%s2330_s18 + $0x988] sm:$0xff] %v1266_v44  ;;  %v920_v54 = vmul.f32 %v2290_v7, %v567_v34 }
 0x13e   : > { %1609 = vst [vmem:[%s2330_s18 + $0x990] sm:$0xff] %v1267_v45  ;;  %1610 = vst [vmem:[%s2330_s18 + $0x998] sm:$0xff] %v1268_v46  ;;  %v921_v55 = vmul.f32 %v2295_v10, %v568_v35  ;;  %v922_v56 = vmul.f32 %v2290_v7, %v569_v40  ;;  %v923_v57 = vmul.f32 %v2295_v10, %v570_v41  ;;  %v588_v35 = vld [vmem:[%s2283_s11 + $0xa68] sm:$0xff]  ;;  %v591_v46 = vld [vmem:[%s2283_s11 + $0xa80] sm:$0xff] }
 0x13f   : > { %1611 = vst [vmem:[%s2330_s18 + $0x9a0] sm:$0xff] %v1269_v50  ;;  %1612 = vst [vmem:[%s2330_s18 + $0x9a8] sm:$0xff] %v1270_v51  ;;  %v924_v60 = vmul.f32 %v2290_v7, %v571_v42  ;;  %v925_v61 = vmul.f32 %v2295_v10, %v572_v47  ;;  %v926_v62 = vmul.f32 %v2290_v7, %v573_v48  ;;  %v592_v51 = vld [vmem:[%s2283_s11 + $0xa88] sm:$0xff] }
 0x140   : > { %1613 = vst [vmem:[%s2330_s18 + $0x9b0] sm:$0xff] %v1271_v52  ;;  %1614 = vst [vmem:[%s2330_s18 + $0x9b8] sm:$0xff] %v1272_v53  ;;  %v927_v63 = vmul.f32 %v2295_v10, %v574_v49  ;;  %v1273_v3 = vadd.f32 %v2292_v8, %v920_v54  ;;  %v1274_v4 = vadd.f32 %v2297_v11, %v921_v55  ;;  %v593_v52 = vld [vmem:[%s2283_s11 + $0xa90] sm:$0xff]  ;;  %v594_v53 = vld [vmem:[%s2283_s11 + $0xa98] sm:$0xff] }
 0x141   : > { %v1275_v5 = vadd.f32 %v2292_v8, %v922_v56  ;;  %v1276_v6 = vadd.f32 %v2297_v11, %v923_v57  ;;  %v1277_v14 = vadd.f32 %v2292_v8, %v924_v60  ;;  %v1278_v15 = vadd.f32 %v2297_v11, %v925_v61 }
 0x142   : > { %v1279_v16 = vadd.f32 %v2292_v8, %v926_v62  ;;  %v1280_v17 = vadd.f32 %v2297_v11, %v927_v63  ;;  %1615 = vst [vmem:[%s2330_s18 + $0x9c0] sm:$0xff] %v1273_v3  ;;  %1616 = vst [vmem:[%s2330_s18 + $0x9c8] sm:$0xff] %v1274_v4  ;;  %v928_v18 = vmul.f32 %v2290_v7, %v575_v58  ;;  %v595_v58 = vld [vmem:[%s2283_s11 + $0xaa0] sm:$0xff] }
 0x143   : > { %1617 = vst [vmem:[%s2330_s18 + $0x9d0] sm:$0xff] %v1275_v5  ;;  %1618 = vst [vmem:[%s2330_s18 + $0x9d8] sm:$0xff] %v1276_v6  ;;  %v929_v19 = vmul.f32 %v2295_v10, %v576_v59  ;;  %v930_v20 = vmul.f32 %v2290_v7, %v577_v0  ;;  %v931_v21 = vmul.f32 %v2295_v10, %v578_v1  ;;  %v596_v59 = vld [vmem:[%s2283_s11 + $0xaa8] sm:$0xff] }
 0x144   : > { %1619 = vst [vmem:[%s2330_s18 + $0x9e0] sm:$0xff] %v1277_v14  ;;  %1620 = vst [vmem:[%s2330_s18 + $0x9e8] sm:$0xff] %v1278_v15  ;;  %v932_v24 = vmul.f32 %v2290_v7, %v579_v2  ;;  %v933_v25 = vmul.f32 %v2295_v10, %v580_v9  ;;  %v934_v26 = vmul.f32 %v2290_v7, %v581_v12 }
 0x145   : > { %1621 = vst [vmem:[%s2330_s18 + $0x9f0] sm:$0xff] %v1279_v16  ;;  %1622 = vst [vmem:[%s2330_s18 + $0x9f8] sm:$0xff] %v1280_v17  ;;  %v935_v27 = vmul.f32 %v2295_v10, %v582_v13  ;;  %v1281_v31 = vadd.f32 %v2292_v8, %v928_v18  ;;  %v1282_v32 = vadd.f32 %v2297_v11, %v929_v19 }
 0x146   : > { %v1283_v33 = vadd.f32 %v2292_v8, %v930_v20  ;;  %v1284_v34 = vadd.f32 %v2297_v11, %v931_v21  ;;  %v1285_v38 = vadd.f32 %v2292_v8, %v932_v24  ;;  %v1286_v39 = vadd.f32 %v2297_v11, %v933_v25 }
 0x147   : > { %v1287_v40 = vadd.f32 %v2292_v8, %v934_v26  ;;  %v1288_v41 = vadd.f32 %v2297_v11, %v935_v27  ;;  %1623 = vst [vmem:[%s2330_s18 + $0xa00] sm:$0xff] %v1281_v31  ;;  %1624 = vst [vmem:[%s2330_s18 + $0xa08] sm:$0xff] %v1282_v32  ;;  %v936_v42 = vmul.f32 %v2290_v7, %v583_v22 }
 0x148   : > { %1625 = vst [vmem:[%s2330_s18 + $0xa10] sm:$0xff] %v1283_v33  ;;  %1626 = vst [vmem:[%s2330_s18 + $0xa18] sm:$0xff] %v1284_v34  ;;  %v937_v43 = vmul.f32 %v2295_v10, %v584_v23  ;;  %v938_v44 = vmul.f32 %v2290_v7, %v585_v28  ;;  %v939_v45 = vmul.f32 %v2295_v10, %v586_v29 }
 0x149   : > { %1627 = vst [vmem:[%s2330_s18 + $0xa20] sm:$0xff] %v1285_v38  ;;  %1628 = vst [vmem:[%s2330_s18 + $0xa28] sm:$0xff] %v1286_v39  ;;  %v940_v47 = vmul.f32 %v2290_v7, %v587_v30  ;;  %v941_v48 = vmul.f32 %v2295_v10, %v588_v35  ;;  %v942_v49 = vmul.f32 %v2290_v7, %v589_v36 }
 0x14a   : > { %1629 = vst [vmem:[%s2330_s18 + $0xa30] sm:$0xff] %v1287_v40  ;;  %1630 = vst [vmem:[%s2330_s18 + $0xa38] sm:$0xff] %v1288_v41  ;;  %v943_v50 = vmul.f32 %v2295_v10, %v590_v37  ;;  %v1289_v54 = vadd.f32 %v2292_v8, %v936_v42  ;;  %v1290_v55 = vadd.f32 %v2297_v11, %v937_v43 }
 0x14b   : > { %v1291_v56 = vadd.f32 %v2292_v8, %v938_v44  ;;  %v1292_v57 = vadd.f32 %v2297_v11, %v939_v45  ;;  %v1293_v60 = vadd.f32 %v2292_v8, %v940_v47  ;;  %v1294_v61 = vadd.f32 %v2297_v11, %v941_v48 }
 0x14c   : > { %v1295_v62 = vadd.f32 %v2292_v8, %v942_v49  ;;  %v1296_v63 = vadd.f32 %v2297_v11, %v943_v50  ;;  %1631 = vst [vmem:[%s2330_s18 + $0xa40] sm:$0xff] %v1289_v54  ;;  %1632 = vst [vmem:[%s2330_s18 + $0xa48] sm:$0xff] %v1290_v55  ;;  %v944_v0 = vmul.f32 %v2290_v7, %v591_v46 }
 0x14d   : > { %1633 = vst [vmem:[%s2330_s18 + $0xa50] sm:$0xff] %v1291_v56  ;;  %1634 = vst [vmem:[%s2330_s18 + $0xa58] sm:$0xff] %v1292_v57  ;;  %v945_v1 = vmul.f32 %v2295_v10, %v592_v51  ;;  %v946_v2 = vmul.f32 %v2290_v7, %v593_v52  ;;  %v947_v3 = vmul.f32 %v2295_v10, %v594_v53 }
 0x14e   : > { %1635 = vst [vmem:[%s2330_s18 + $0xa60] sm:$0xff] %v1293_v60  ;;  %1636 = vst [vmem:[%s2330_s18 + $0xa68] sm:$0xff] %v1294_v61  ;;  %v948_v4 = vmul.f32 %v2290_v7, %v595_v58  ;;  %v949_v5 = vmul.f32 %v2295_v10, %v596_v59  ;;  %v1297_v6 = vadd.f32 %v2292_v8, %v944_v0 }
 0x14f   : > { %1637 = vst [vmem:[%s2330_s18 + $0xa70] sm:$0xff] %v1295_v62  ;;  %1638 = vst [vmem:[%s2330_s18 + $0xa78] sm:$0xff] %v1296_v63  ;;  %v1298_v9 = vadd.f32 %v2297_v11, %v945_v1  ;;  %v1299_v12 = vadd.f32 %v2292_v8, %v946_v2  ;;  %v1300_v13 = vadd.f32 %v2297_v11, %v947_v3 }
 0x150   : > { %v1301_v7 = vadd.f32 %v2292_v8, %v948_v4  ;;  %v1302_v10 = vadd.f32 %v2297_v11, %v949_v5  ;;  %1639 = vst [vmem:[%s2330_s18 + $0xa80] sm:$0xff] %v1297_v6 }
 0x151   : > { %1640 = vst [vmem:[%s2330_s18 + $0xa88] sm:$0xff] %v1298_v9  ;;  %1641 = vst [vmem:[%s2330_s18 + $0xa90] sm:$0xff] %v1299_v12 }
 0x152   : > { %1642 = vst [vmem:[%s2330_s18 + $0xa98] sm:$0xff] %v1300_v13  ;;  %1643 = vst [vmem:[%s2330_s18 + $0xaa0] sm:$0xff] %v1301_v7 }
 0x153   : > { %1644 = vst [vmem:[%s2330_s18 + $0xaa8] sm:$0xff] %v1302_v10 }
 0x154   : > { %1981 = shalt.err (!%p1978_p4)
}
 0x155   : > { %s1982_s19 = scalar_lea.hbm %s3665_s6, 43776  ;;  %s1986_s8 = scalar_lea.hbm %s3728_s3, 131328 }
 0x156   : > { %p1983_p8 = scmp.ne.s32.totalorder %s3665_s6, %s1982_s19  ;;  %p1987_p10 = scmp.lt.u32.totalorder %s3665_s6, %s3728_s3 }
 0x157   : > { %p1988_p11 = scmp.lt.u32.totalorder %s1986_s8, %s1982_s19  ;;  %p1990_p13 = scmp.lt.u32.totalorder %s1982_s19, %s3665_s6 }
 0x158   : > { %p1984_p12 = pnand %p1983_p8, %p3748_p0 }
 0x159   : > { %p1989_p7 = por %p1988_p11, %p1987_p10 }
 0x15a   : > { %p1985_p6 = pneg %p1984_p12 }
 0x15b   : > { %p1991_p5 = por %p1990_p13, %p1989_p7 }
 0x15d   : > { %p1992_p2 = pnand %p1991_p5, %p1985_p6 }
 0x15f   : > { %1995 = shalt.err (!%p1992_p2)
}
 0x160   : > { %s2066_s11 = smov 256   ;;  %s2067_s18 = smov 16  }
 0x161   : > { %1805 = dma.vmem_to_hbm [thread:$0]  (%p3748_p0), %s3667_s5, 43776, %s3665_s6, %s3679_s7, %s2066_s11, %s2066_s11, %s2067_s18  }
 0x162 PF: > { %p1827_p3 = scmp.ge.s32.totalorder %s2058_s17, 2  ;;  %s1677_s22 = sand.u32 1, %s2038_s12  }
 0x163   : > { %p3749_p9 = scmp.ne.s32.totalorder %s3737_s24, 0  ;;  %s1678_s15 = scalar_lea.sflag [#allocation4], %s1677_s22 }
 0x165   : > { %p1819_p1 = pnand %p1827_p3, %p3749_p9 }
 0x167   : > { %2033 = dma.done.wait (!%p1819_p1), %s1678_s15, 43776  }
 0x168   : > { %2035 = vsyncadd (!%p1819_p1), %s1678_s15, 4294923520  ;;  %s18_s17 = sadd.s32 1, %s2058_s17   ;;  %s3750_s12 = smov %s2042_s13 }
 0x169   : > { %p15_p4 = scmp.ge.s32.totalorder %s18_s17, 5   ;;  %s3751_s13 = smov %s2046_s14 }
 0x16a   : > { %s3752_s14 = smov %s2234_s27  ;;  %s3753_s15 = smov %s2054_s16 }
 0x16b   : > { %s3754_s16 = smov %s3756_s21  ;;  %17 = sbr.rel (!%p15_p4) target bundleno = 6 (0x6), region = 86 }
 0x172   :  { %1683 = vsyncpa [#allocation3], 1 }
 0x173   :  { %1685 = vsyncpa [#allocation3 + $0x1], 1 }
 0x174   :  { %1686 = vsyncpa [#allocation6], 1 }
 0x175   :  { %1687 = vsyncpa [#allocation4], 1 }
 0x176   :  { %1689 = vsyncpa [#allocation4 + $0x1], 1 }

</bundles_post_ra>
